<compile_context>
chip_gen: v6e
topology: v6e:2x2x1
jax: 0.10.0
libtpu: 0.0.40
codegen_flags: <defaults>
</compile_context>

<pallas_src>
import functools

import jax
import jax.numpy as jnp
import numpy as np
from jax import lax
from jax.experimental import pallas as pl
from jax.experimental.pallas import tpu as pltpu


# ----------------------------------------------------------------------------
# Pallas kernel: one block of images per grid step, (C, P) orientation.
#   x_ref  : (1, Cin, Pb)  f32   channels on sublanes, flattened positions on lanes
#   w1_ref : (Cmid, Cin)   bf16  conv1 (grouped->dense, bn1 scale + shuffle folded)
#   cp_ref : (Cmid, 11)    f32   cols 0..8 depthwise taps*bn2 scale, 9 bn1 bias, 10 bn2 bias
#   rc_ref : (2, Pb)       i32   per-position (row, col) inside its image
#   w3_ref : (Cout, Cmid)  bf16  conv3 (grouped->dense, bn3 scale folded)
#   b3_ref : (Cout, 1)     f32   bn3 bias
#   o_ref  : (1, Cout, Pb) f32
# ----------------------------------------------------------------------------
def bottleneck_kernel(x_ref, w1_ref, cp_ref, rc_ref, w3_ref, b3_ref, o_ref,
                      *, H, W):
    cp = cp_ref[...]                                       # (Cmid, 11)

    # ---- conv1 (grouped 1x1; shuffle + bn1 scale folded) + bias + relu ------
    # bf16 MXU operands, f32 accumulate.
    h1 = jnp.dot(w1_ref[...], x_ref[0].astype(jnp.bfloat16),
                 preferred_element_type=jnp.float32)
    h1 = jnp.maximum(h1 + cp[:, 9:10], 0.0)                # (Cmid, Pb), f32

    # ---- conv2: 3x3 depthwise, stride=1, pad=1 ------------------------------
    # 9 lane-rolled FMAs; boundary masks come from row/col compares (VALU has
    # slack), not from a pre-masked (9, Cmid, Pb) operand.  The roll's
    # wrap-around lanes are always zeroed by the same masks.
    Pb = h1.shape[1]
    rc = rc_ref[...]
    row = rc[0:1, :]                                       # (1, Pb) int32
    col = rc[1:2, :]

    acc = jnp.zeros_like(h1)
    k = 0
    for dy in (-1, 0, 1):
        for dx in (-1, 0, 1):
            shift = dy * W + dx
            if shift == 0:
                shifted = h1
            else:
                shifted = pltpu.roll(h1, shift=(-shift) % Pb, axis=1)
            if dy != 0 or dx != 0:
                valid = ((row + dy >= 0) & (row + dy < H) &
                         (col + dx >= 0) & (col + dx < W))
                shifted = jnp.where(valid, shifted, 0.0)
            acc = acc + shifted * cp[:, k:k + 1]           # per-channel tap
            k += 1
    h2 = jnp.maximum(acc + cp[:, 10:11], 0.0)              # bn2 bias + relu

    # ---- conv3 (grouped 1x1, bn3 folded) + identity shortcut + relu ---------
    h3 = jnp.dot(w3_ref[...], h2.astype(jnp.bfloat16),
                 preferred_element_type=jnp.float32)
    # Re-read x from the ref here (instead of holding the top-of-kernel load
    # live across both matmuls and the 9-tap loop) so its vregs can be freed
    # during the depthwise phase.
    o_ref[0] = jnp.maximum(h3 + b3_ref[...] + x_ref[0], 0.0)


# ----------------------------------------------------------------------------
# Host-side folding + generation-aware sizing + pallas_call wrapper.
# ----------------------------------------------------------------------------
def _grouped_1x1_to_dense(w, groups):
    """PyTorch grouped 1x1 conv weight (Cout, Cin//g, 1, 1) -> dense (Cin, Cout)."""
    cout, icpg = w.shape[0], w.shape[1]
    ocpg = cout // groups
    cin = icpg * groups
    w2d = w[:, :, 0, 0]                                    # (Cout, Cin//g)
    dense = jnp.zeros((cin, cout), jnp.float32)
    for gi in range(groups):
        dense = dense.at[gi * icpg:(gi + 1) * icpg,
                         gi * ocpg:(gi + 1) * ocpg].set(
            w2d[gi * ocpg:(gi + 1) * ocpg, :].T)
    return dense


def _tpu_info():
    try:
        return pltpu.get_tpu_info()
    except Exception:
        return None


def _num_tensorcores(info):
    """TensorCores per chip: 2 on v7x, 1 on v5e/v6e (best-effort probe)."""
    if info is None:
        return 1
    for attr in ("num_tensorcores", "tensorcore_count", "num_cores", "core_count"):
        v = getattr(info, attr, None)
        if isinstance(v, int) and 1 <= v <= 8:
            return v
    if "7" in str(getattr(info, "chip_version", "")):
        return 2
    return 1


def _vmem_capacity_bytes(info):
    if info is None:
        return 64 * 2 ** 20
    for attr in ("vmem_capacity_bytes", "vmem_bytes", "vmem_size_bytes"):
        v = getattr(info, attr, None)
        if isinstance(v, int) and v > 0:
            return v
    return 64 * 2 ** 20


def _pick_num_blocks(N, Cin, Cmid, Cout, H, W, n_cores, budget_bytes):
    """Fewest grid steps (largest lane-dense blocks) whose per-block VMEM
    footprint fits the budget; prefer multiples of the TensorCore count so
    both v7x cores stay fed.  Tiling is always by whole images, so the 3x3
    depthwise never needs halo exchange."""
    hw = H * W
    # double-buffered x/out blocks + in-kernel f32/bf16 temporaries, per image
    per_img = hw * 4 * (3 * (Cin + Cout) + 6 * Cmid) + hw * 2 * (Cin + Cmid)
    divisors = [d for d in range(1, N + 1) if N % d == 0]
    for require_core_multiple in (True, False):
        for nb in divisors:
            if require_core_multiple and nb % n_cores != 0:
                continue
            if (N // nb) * per_img <= budget_bytes:
                return nb
    return N


def bottleneck_pallas(x_nchw, p, num_blocks=None):
    N, Cin, H, W = x_nchw.shape
    g, groups = p["g"], p["groups"]
    Cmid = p["w1"].shape[0]
    Cout = p["w3"].shape[0]
    assert Cin == Cout, "stride==1 identity shortcut requires Cin == Cout"
    eps = 1e-5

    info = _tpu_info()
    n_cores = _num_tensorcores(info)
    # Explicit scoped-VMEM limit: ~3/4 of physical (48 MiB on v7x's 64 MiB,
    # 96 MiB on v5e/v6e's 128 MiB); the compiler defaults are only 16/32 MiB.
    vmem_limit = max(int(min(_vmem_capacity_bytes(info), 128 * 2 ** 20) * 3 // 4),
                     32 * 2 ** 20)
    if num_blocks is None:
        num_blocks = _pick_num_blocks(N, Cin, Cmid, Cout, H, W, n_cores,
                                      int(vmem_limit * 0.8))
    assert N % num_blocks == 0
    imgs = N // num_blocks
    Pb = imgs * H * W   # lane axis; H*W multiples of 128 keep stores unmasked

    # ---- fold BatchNorm (inference) into per-channel scale / bias ----
    s1 = p["gamma1"] / jnp.sqrt(p["var1"] + eps); b1 = p["beta1"] - p["mean1"] * s1
    s2 = p["gamma2"] / jnp.sqrt(p["var2"] + eps); b2 = p["beta2"] - p["mean2"] * s2
    s3 = p["gamma3"] / jnp.sqrt(p["var3"] + eps); b3 = p["beta3"] - p["mean3"] * s3

    # conv1: grouped 1x1 -> dense, fold bn1 scale, fold channel-shuffle perm.
    w1_dense = _grouped_1x1_to_dense(p["w1"], g)                     # (Cin, Cmid)
    perm = np.array([(j % g) * (Cmid // g) + (j // g) for j in range(Cmid)],
                    dtype=np.int32)
    w1t = (w1_dense * s1[None, :]).T[perm, :].astype(jnp.bfloat16)   # (Cmid, Cin)
    b1p = b1[perm]

    # conv2: per-channel taps * bn2 scale packed with bn1/bn2 biases into one
    # tiny (Cmid, 11) operand (cols 0..8 taps, 9 bn1 bias, 10 bn2 bias).
    taps = p["w2"][:, 0, :, :].reshape(Cmid, 9).astype(jnp.float32) * s2[:, None]
    cp = jnp.concatenate([taps, b1p[:, None], b2[:, None]],
                         axis=1).astype(jnp.float32)                 # (Cmid, 11)

    # per-position (row, col) inside each packed image, for in-kernel masks.
    pos = np.arange(Pb)
    rc = jnp.asarray(np.stack([(pos // W) % H, pos % W]).astype(np.int32))

    # conv3: grouped 1x1 -> dense, fold bn3 scale.
    w3_dense = _grouped_1x1_to_dense(p["w3"], groups)                # (Cmid, Cout)
    w3t = (w3_dense * s3[None, :]).T.astype(jnp.bfloat16)            # (Cout, Cmid)
    b3v = b3.reshape(Cout, 1).astype(jnp.float32)

    # Layout: NCHW -> (num_blocks, C, imgs*H*W).  In a full ShuffleNet this
    # (C, P) layout and the folded params should stay resident across
    # consecutive BottleNecks instead of round-tripping through NCHW per layer.
    x_blk = (x_nchw.reshape(num_blocks, imgs, Cin, H * W)
             .transpose(0, 2, 1, 3).reshape(num_blocks, Cin, Pb))

    kernel = functools.partial(bottleneck_kernel, H=H, W=W)
    out_blk = pl.pallas_call(
        kernel,
        out_shape=jax.ShapeDtypeStruct((num_blocks, Cout, Pb), jnp.float32),
        grid=(num_blocks,),
        in_specs=[
            pl.BlockSpec((1, Cin, Pb), lambda n: (n, 0, 0)),
            pl.BlockSpec((Cmid, Cin), lambda n: (0, 0)),
            pl.BlockSpec((Cmid, 11), lambda n: (0, 0)),
            pl.BlockSpec((2, Pb), lambda n: (0, 0)),
            pl.BlockSpec((Cout, Cmid), lambda n: (0, 0)),
            pl.BlockSpec((Cout, 1), lambda n: (0, 0)),
        ],
        out_specs=pl.BlockSpec((1, Cout, Pb), lambda n: (n, 0, 0)),
        compiler_params=pltpu.CompilerParams(
            dimension_semantics=("parallel",),
            vmem_limit_bytes=vmem_limit),
    )(x_blk, w1t, cp, rc, w3t, b3v)

    # (num_blocks, Cout, imgs*H*W) -> NCHW
    out = (out_blk.reshape(num_blocks, Cout, imgs, H, W)
           .transpose(0, 2, 1, 3, 4).reshape(N, Cout, H, W))
    return out


# ----------------------------------------------------------------------------
# Pure-JAX reference (NCHW, mirrors the PyTorch module, stride=1, true f32).
# ----------------------------------------------------------------------------
def _bn(x, gamma, beta, mean, var, eps=1e-5):
    r = lambda v: v[None, :, None, None]
    return (x - r(mean)) / jnp.sqrt(r(var) + eps) * r(gamma) + r(beta)


def reference_forward(x, p):
    dn = ("NCHW", "OIHW", "NCHW")
    hp = lax.Precision.HIGHEST
    g, groups = p["g"], p["groups"]
    h = lax.conv_general_dilated(x, p["w1"], (1, 1), "VALID",
                                 feature_group_count=g, dimension_numbers=dn,
                                 precision=hp)
    h = jax.nn.relu(_bn(h, p["gamma1"], p["beta1"], p["mean1"], p["var1"]))
    n, c, hh, ww = h.shape
    h = h.reshape(n, g, c // g, hh, ww).transpose(0, 2, 1, 3, 4).reshape(n, c, hh, ww)
    h = lax.conv_general_dilated(h, p["w2"], (1, 1), ((1, 1), (1, 1)),
                                 feature_group_count=c, dimension_numbers=dn,
                                 precision=hp)
    h = jax.nn.relu(_bn(h, p["gamma2"], p["beta2"], p["mean2"], p["var2"]))
    h = lax.conv_general_dilated(h, p["w3"], (1, 1), "VALID",
                                 feature_group_count=groups, dimension_numbers=dn,
                                 precision=hp)
    h = _bn(h, p["gamma3"], p["beta3"], p["mean3"], p["var3"])
    return jax.nn.relu(h + x)


if __name__ == "__main__":
    # BottleNeck(in_planes=16, out_planes=16, stride=1, groups=2)
    N, Cin, H, W = 2, 16, 16, 16
    out_planes, groups, stride = 16, 2, 1
    Cmid = out_planes // 4
    g = 1 if Cin == 24 else groups

    key = jax.random.PRNGKey(0)
    ks = jax.random.split(key, 20)
    params = dict(
        g=g, groups=groups,
        w1=0.2 * jax.random.normal(ks[0], (Cmid, Cin // g, 1, 1), jnp.float32),
        w2=0.2 * jax.random.normal(ks[1], (Cmid, 1, 3, 3), jnp.float32),
        w3=0.2 * jax.random.normal(ks[2], (out_planes, Cmid // groups, 1, 1), jnp.float32),
        gamma1=jax.random.uniform(ks[3], (Cmid,), minval=0.5, maxval=1.5),
        beta1=0.1 * jax.random.normal(ks[4], (Cmid,)),
        mean1=0.1 * jax.random.normal(ks[5], (Cmid,)),
        var1=jax.random.uniform(ks[6], (Cmid,), minval=0.5, maxval=1.5),
        gamma2=jax.random.uniform(ks[7], (Cmid,), minval=0.5, maxval=1.5),
        beta2=0.1 * jax.random.normal(ks[8], (Cmid,)),
        mean2=0.1 * jax.random.normal(ks[9], (Cmid,)),
        var2=jax.random.uniform(ks[10], (Cmid,), minval=0.5, maxval=1.5),
        gamma3=jax.random.uniform(ks[11], (out_planes,), minval=0.5, maxval=1.5),
        beta3=0.1 * jax.random.normal(ks[12], (out_planes,)),
        mean3=0.1 * jax.random.normal(ks[13], (out_planes,)),
        var3=jax.random.uniform(ks[14], (out_planes,), minval=0.5, maxval=1.5),
    )
    x = jax.random.normal(ks[15], (N, Cin, H, W), jnp.float32)   # NCHW like PyTorch

    out = jax.block_until_ready(bottleneck_pallas(x, params))
    ref = jax.block_until_ready(reference_forward(x, params))

    assert out.shape == ref.shape == (N, out_planes, H, W)
    # Kernel feeds the MXU with bf16 operands (f32 accumulate); compare against
    # a true-f32 reference with a bf16-appropriate tolerance.
    err = float(jnp.max(jnp.abs(out - ref)))
    assert err < 2e-2, f"max abs err {err}"
    print("KERNEL_OK")
</pallas_src>

<mosaic_0001>
module attributes {stable_mosaic.version = 11 : i64} {
  func.func @bottleneck_kernel(%arg0: i32, %arg1: memref<1x16x512xf32, #tpu.memory_space<vmem>>, %arg2: memref<4x16xbf16, #tpu.memory_space<vmem>>, %arg3: memref<4x11xf32, #tpu.memory_space<vmem>>, %arg4: memref<2x512xi32, #tpu.memory_space<vmem>>, %arg5: memref<16x4xbf16, #tpu.memory_space<vmem>>, %arg6: memref<16x1xf32, #tpu.memory_space<vmem>>, %arg7: memref<1x16x512xf32, #tpu.memory_space<vmem>>) attributes {dimension_semantics = [#tpu.dimension_semantics<parallel>], iteration_bounds = array<i64: 1>, scalar_prefetch = 0 : i64, scratch_operands = 0 : i64, tpu.core_type = #tpu.core_type<tc>, window_params = [{transform_indices = @transform_0, window_bounds = array<i64: 1, 16, 512>}, {pipeline_mode = #tpu.pipeline_mode<synchronous>, transform_indices = @transform_1, window_bounds = array<i64: 4, 16>}, {pipeline_mode = #tpu.pipeline_mode<synchronous>, transform_indices = @transform_2, window_bounds = array<i64: 4, 11>}, {pipeline_mode = #tpu.pipeline_mode<synchronous>, transform_indices = @transform_3, window_bounds = array<i64: 2, 512>}, {pipeline_mode = #tpu.pipeline_mode<synchronous>, transform_indices = @transform_4, window_bounds = array<i64: 16, 4>}, {pipeline_mode = #tpu.pipeline_mode<synchronous>, transform_indices = @transform_5, window_bounds = array<i64: 16, 1>}, {transform_indices = @transform_6, window_bounds = array<i64: 1, 16, 512>}]} {
    %c0 = arith.constant 0 : index
    %c0_0 = arith.constant 0 : index
    %0 = vector.load %arg3[%c0, %c0_0] : memref<4x11xf32, #tpu.memory_space<vmem>>, vector<4x11xf32>
    %c0_1 = arith.constant 0 : index
    %c0_2 = arith.constant 0 : index
    %1 = vector.load %arg2[%c0_1, %c0_2] : memref<4x16xbf16, #tpu.memory_space<vmem>>, vector<4x16xbf16>
    %c0_3 = arith.constant 0 : index
    %c0_4 = arith.constant 0 : index
    %c0_5 = arith.constant 0 : index
    %2 = vector.load %arg1[%c0_3, %c0_4, %c0_5] : memref<1x16x512xf32, #tpu.memory_space<vmem>>, vector<1x16x512xf32>
    %3 = vector.shape_cast %2 : vector<1x16x512xf32> to vector<16x512xf32>
    %4 = arith.truncf %3 : vector<16x512xf32> to vector<16x512xbf16>
    %cst = arith.constant dense<0.000000e+00> : vector<4x512xf32>
    %5 = tpu.matmul %1, %4, %cst {dimension_numbers = #tpu.dot_dimension_numbers<[1], [0], [0], [1], [0, 0, 1, 1], [], []>} : vector<4x16xbf16>, vector<16x512xbf16>, vector<4x512xf32> -> vector<4x512xf32>
    %6 = vector.extract_strided_slice %0 {offsets = [0, 9], sizes = [4, 1], strides = [1, 1]} : vector<4x11xf32> to vector<4x1xf32>
    %7 = vector.broadcast %6 : vector<4x1xf32> to vector<4x512xf32>
    %8 = arith.addf %5, %7 : vector<4x512xf32>
    %cst_6 = arith.constant 0.000000e+00 : f32
    %9 = vector.broadcast %cst_6 : f32 to vector<4x512xf32>
    %10 = arith.maximumf %8, %9 : vector<4x512xf32>
    %c0_7 = arith.constant 0 : index
    %c0_8 = arith.constant 0 : index
    %11 = vector.load %arg4[%c0_7, %c0_8] : memref<2x512xi32, #tpu.memory_space<vmem>>, vector<2x512xi32>
    %12 = vector.extract_strided_slice %11 {offsets = [0, 0], sizes = [1, 512], strides = [1, 1]} : vector<2x512xi32> to vector<1x512xi32>
    %13 = vector.extract_strided_slice %11 {offsets = [1, 0], sizes = [1, 512], strides = [1, 1]} : vector<2x512xi32> to vector<1x512xi32>
    %cst_9 = arith.constant 0.000000e+00 : f32
    %14 = vector.broadcast %cst_9 : f32 to vector<4x512xf32>
    %c17_i32 = arith.constant 17 : i32
    %15 = tpu.dynamic_rotate %10 by %c17_i32 dim 1 : vector<4x512xf32>, i32 -> vector<4x512xf32>
    %c-1_i32 = arith.constant -1 : i32
    %16 = vector.broadcast %c-1_i32 : i32 to vector<1x512xi32>
    %17 = arith.addi %12, %16 : vector<1x512xi32>
    %c0_i32 = arith.constant 0 : i32
    %18 = vector.broadcast %c0_i32 : i32 to vector<1x512xi32>
    %19 = arith.cmpi sge, %17, %18 : vector<1x512xi32>
    %c-1_i32_10 = arith.constant -1 : i32
    %20 = vector.broadcast %c-1_i32_10 : i32 to vector<1x512xi32>
    %21 = arith.addi %12, %20 : vector<1x512xi32>
    %c16_i32 = arith.constant 16 : i32
    %22 = vector.broadcast %c16_i32 : i32 to vector<1x512xi32>
    %23 = arith.cmpi slt, %21, %22 : vector<1x512xi32>
    %24 = arith.andi %19, %23 : vector<1x512xi1>
    %c-1_i32_11 = arith.constant -1 : i32
    %25 = vector.broadcast %c-1_i32_11 : i32 to vector<1x512xi32>
    %26 = arith.addi %13, %25 : vector<1x512xi32>
    %c0_i32_12 = arith.constant 0 : i32
    %27 = vector.broadcast %c0_i32_12 : i32 to vector<1x512xi32>
    %28 = arith.cmpi sge, %26, %27 : vector<1x512xi32>
    %29 = arith.andi %24, %28 : vector<1x512xi1>
    %c-1_i32_13 = arith.constant -1 : i32
    %30 = vector.broadcast %c-1_i32_13 : i32 to vector<1x512xi32>
    %31 = arith.addi %13, %30 : vector<1x512xi32>
    %c16_i32_14 = arith.constant 16 : i32
    %32 = vector.broadcast %c16_i32_14 : i32 to vector<1x512xi32>
    %33 = arith.cmpi slt, %31, %32 : vector<1x512xi32>
    %34 = arith.andi %29, %33 : vector<1x512xi1>
    %cst_15 = arith.constant 0.000000e+00 : f32
    %35 = vector.shape_cast %34 : vector<1x512xi1> to vector<1x512xi1>
    %36 = vector.broadcast %35 : vector<1x512xi1> to vector<4x512xi1>
    %37 = vector.broadcast %cst_15 : f32 to vector<4x512xf32>
    %38 = arith.select %36, %15, %37 : vector<4x512xi1>, vector<4x512xf32>
    %39 = vector.extract_strided_slice %0 {offsets = [0, 0], sizes = [4, 1], strides = [1, 1]} : vector<4x11xf32> to vector<4x1xf32>
    %40 = vector.broadcast %39 : vector<4x1xf32> to vector<4x512xf32>
    %41 = arith.mulf %38, %40 : vector<4x512xf32>
    %42 = arith.addf %14, %41 : vector<4x512xf32>
    %c16_i32_16 = arith.constant 16 : i32
    %43 = tpu.dynamic_rotate %10 by %c16_i32_16 dim 1 : vector<4x512xf32>, i32 -> vector<4x512xf32>
    %c-1_i32_17 = arith.constant -1 : i32
    %44 = vector.broadcast %c-1_i32_17 : i32 to vector<1x512xi32>
    %45 = arith.addi %12, %44 : vector<1x512xi32>
    %c0_i32_18 = arith.constant 0 : i32
    %46 = vector.broadcast %c0_i32_18 : i32 to vector<1x512xi32>
    %47 = arith.cmpi sge, %45, %46 : vector<1x512xi32>
    %c-1_i32_19 = arith.constant -1 : i32
    %48 = vector.broadcast %c-1_i32_19 : i32 to vector<1x512xi32>
    %49 = arith.addi %12, %48 : vector<1x512xi32>
    %c16_i32_20 = arith.constant 16 : i32
    %50 = vector.broadcast %c16_i32_20 : i32 to vector<1x512xi32>
    %51 = arith.cmpi slt, %49, %50 : vector<1x512xi32>
    %52 = arith.andi %47, %51 : vector<1x512xi1>
    %c0_i32_21 = arith.constant 0 : i32
    %53 = vector.broadcast %c0_i32_21 : i32 to vector<1x512xi32>
    %54 = arith.addi %13, %53 : vector<1x512xi32>
    %c0_i32_22 = arith.constant 0 : i32
    %55 = vector.broadcast %c0_i32_22 : i32 to vector<1x512xi32>
    %56 = arith.cmpi sge, %54, %55 : vector<1x512xi32>
    %57 = arith.andi %52, %56 : vector<1x512xi1>
    %c0_i32_23 = arith.constant 0 : i32
    %58 = vector.broadcast %c0_i32_23 : i32 to vector<1x512xi32>
    %59 = arith.addi %13, %58 : vector<1x512xi32>
    %c16_i32_24 = arith.constant 16 : i32
    %60 = vector.broadcast %c16_i32_24 : i32 to vector<1x512xi32>
    %61 = arith.cmpi slt, %59, %60 : vector<1x512xi32>
    %62 = arith.andi %57, %61 : vector<1x512xi1>
    %cst_25 = arith.constant 0.000000e+00 : f32
    %63 = vector.shape_cast %62 : vector<1x512xi1> to vector<1x512xi1>
    %64 = vector.broadcast %63 : vector<1x512xi1> to vector<4x512xi1>
    %65 = vector.broadcast %cst_25 : f32 to vector<4x512xf32>
    %66 = arith.select %64, %43, %65 : vector<4x512xi1>, vector<4x512xf32>
    %67 = vector.extract_strided_slice %0 {offsets = [0, 1], sizes = [4, 1], strides = [1, 1]} : vector<4x11xf32> to vector<4x1xf32>
    %68 = vector.broadcast %67 : vector<4x1xf32> to vector<4x512xf32>
    %69 = arith.mulf %66, %68 : vector<4x512xf32>
    %70 = arith.addf %42, %69 : vector<4x512xf32>
    %c15_i32 = arith.constant 15 : i32
    %71 = tpu.dynamic_rotate %10 by %c15_i32 dim 1 : vector<4x512xf32>, i32 -> vector<4x512xf32>
    %c-1_i32_26 = arith.constant -1 : i32
    %72 = vector.broadcast %c-1_i32_26 : i32 to vector<1x512xi32>
    %73 = arith.addi %12, %72 : vector<1x512xi32>
    %c0_i32_27 = arith.constant 0 : i32
    %74 = vector.broadcast %c0_i32_27 : i32 to vector<1x512xi32>
    %75 = arith.cmpi sge, %73, %74 : vector<1x512xi32>
    %c-1_i32_28 = arith.constant -1 : i32
    %76 = vector.broadcast %c-1_i32_28 : i32 to vector<1x512xi32>
    %77 = arith.addi %12, %76 : vector<1x512xi32>
    %c16_i32_29 = arith.constant 16 : i32
    %78 = vector.broadcast %c16_i32_29 : i32 to vector<1x512xi32>
    %79 = arith.cmpi slt, %77, %78 : vector<1x512xi32>
    %80 = arith.andi %75, %79 : vector<1x512xi1>
    %c1_i32 = arith.constant 1 : i32
    %81 = vector.broadcast %c1_i32 : i32 to vector<1x512xi32>
    %82 = arith.addi %13, %81 : vector<1x512xi32>
    %c0_i32_30 = arith.constant 0 : i32
    %83 = vector.broadcast %c0_i32_30 : i32 to vector<1x512xi32>
    %84 = arith.cmpi sge, %82, %83 : vector<1x512xi32>
    %85 = arith.andi %80, %84 : vector<1x512xi1>
    %c1_i32_31 = arith.constant 1 : i32
    %86 = vector.broadcast %c1_i32_31 : i32 to vector<1x512xi32>
    %87 = arith.addi %13, %86 : vector<1x512xi32>
    %c16_i32_32 = arith.constant 16 : i32
    %88 = vector.broadcast %c16_i32_32 : i32 to vector<1x512xi32>
    %89 = arith.cmpi slt, %87, %88 : vector<1x512xi32>
    %90 = arith.andi %85, %89 : vector<1x512xi1>
    %cst_33 = arith.constant 0.000000e+00 : f32
    %91 = vector.shape_cast %90 : vector<1x512xi1> to vector<1x512xi1>
    %92 = vector.broadcast %91 : vector<1x512xi1> to vector<4x512xi1>
    %93 = vector.broadcast %cst_33 : f32 to vector<4x512xf32>
    %94 = arith.select %92, %71, %93 : vector<4x512xi1>, vector<4x512xf32>
    %95 = vector.extract_strided_slice %0 {offsets = [0, 2], sizes = [4, 1], strides = [1, 1]} : vector<4x11xf32> to vector<4x1xf32>
    %96 = vector.broadcast %95 : vector<4x1xf32> to vector<4x512xf32>
    %97 = arith.mulf %94, %96 : vector<4x512xf32>
    %98 = arith.addf %70, %97 : vector<4x512xf32>
    %c1_i32_34 = arith.constant 1 : i32
    %99 = tpu.dynamic_rotate %10 by %c1_i32_34 dim 1 : vector<4x512xf32>, i32 -> vector<4x512xf32>
    %c0_i32_35 = arith.constant 0 : i32
    %100 = vector.broadcast %c0_i32_35 : i32 to vector<1x512xi32>
    %101 = arith.addi %12, %100 : vector<1x512xi32>
    %c0_i32_36 = arith.constant 0 : i32
    %102 = vector.broadcast %c0_i32_36 : i32 to vector<1x512xi32>
    %103 = arith.cmpi sge, %101, %102 : vector<1x512xi32>
    %c0_i32_37 = arith.constant 0 : i32
    %104 = vector.broadcast %c0_i32_37 : i32 to vector<1x512xi32>
    %105 = arith.addi %12, %104 : vector<1x512xi32>
    %c16_i32_38 = arith.constant 16 : i32
    %106 = vector.broadcast %c16_i32_38 : i32 to vector<1x512xi32>
    %107 = arith.cmpi slt, %105, %106 : vector<1x512xi32>
    %108 = arith.andi %103, %107 : vector<1x512xi1>
    %c-1_i32_39 = arith.constant -1 : i32
    %109 = vector.broadcast %c-1_i32_39 : i32 to vector<1x512xi32>
    %110 = arith.addi %13, %109 : vector<1x512xi32>
    %c0_i32_40 = arith.constant 0 : i32
    %111 = vector.broadcast %c0_i32_40 : i32 to vector<1x512xi32>
    %112 = arith.cmpi sge, %110, %111 : vector<1x512xi32>
    %113 = arith.andi %108, %112 : vector<1x512xi1>
    %c-1_i32_41 = arith.constant -1 : i32
    %114 = vector.broadcast %c-1_i32_41 : i32 to vector<1x512xi32>
    %115 = arith.addi %13, %114 : vector<1x512xi32>
    %c16_i32_42 = arith.constant 16 : i32
    %116 = vector.broadcast %c16_i32_42 : i32 to vector<1x512xi32>
    %117 = arith.cmpi slt, %115, %116 : vector<1x512xi32>
    %118 = arith.andi %113, %117 : vector<1x512xi1>
    %cst_43 = arith.constant 0.000000e+00 : f32
    %119 = vector.shape_cast %118 : vector<1x512xi1> to vector<1x512xi1>
    %120 = vector.broadcast %119 : vector<1x512xi1> to vector<4x512xi1>
    %121 = vector.broadcast %cst_43 : f32 to vector<4x512xf32>
    %122 = arith.select %120, %99, %121 : vector<4x512xi1>, vector<4x512xf32>
    %123 = vector.extract_strided_slice %0 {offsets = [0, 3], sizes = [4, 1], strides = [1, 1]} : vector<4x11xf32> to vector<4x1xf32>
    %124 = vector.broadcast %123 : vector<4x1xf32> to vector<4x512xf32>
    %125 = arith.mulf %122, %124 : vector<4x512xf32>
    %126 = arith.addf %98, %125 : vector<4x512xf32>
    %127 = vector.extract_strided_slice %0 {offsets = [0, 4], sizes = [4, 1], strides = [1, 1]} : vector<4x11xf32> to vector<4x1xf32>
    %128 = vector.broadcast %127 : vector<4x1xf32> to vector<4x512xf32>
    %129 = arith.mulf %10, %128 : vector<4x512xf32>
    %130 = arith.addf %126, %129 : vector<4x512xf32>
    %c511_i32 = arith.constant 511 : i32
    %131 = tpu.dynamic_rotate %10 by %c511_i32 dim 1 : vector<4x512xf32>, i32 -> vector<4x512xf32>
    %c0_i32_44 = arith.constant 0 : i32
    %132 = vector.broadcast %c0_i32_44 : i32 to vector<1x512xi32>
    %133 = arith.addi %12, %132 : vector<1x512xi32>
    %c0_i32_45 = arith.constant 0 : i32
    %134 = vector.broadcast %c0_i32_45 : i32 to vector<1x512xi32>
    %135 = arith.cmpi sge, %133, %134 : vector<1x512xi32>
    %c0_i32_46 = arith.constant 0 : i32
    %136 = vector.broadcast %c0_i32_46 : i32 to vector<1x512xi32>
    %137 = arith.addi %12, %136 : vector<1x512xi32>
    %c16_i32_47 = arith.constant 16 : i32
    %138 = vector.broadcast %c16_i32_47 : i32 to vector<1x512xi32>
    %139 = arith.cmpi slt, %137, %138 : vector<1x512xi32>
    %140 = arith.andi %135, %139 : vector<1x512xi1>
    %c1_i32_48 = arith.constant 1 : i32
    %141 = vector.broadcast %c1_i32_48 : i32 to vector<1x512xi32>
    %142 = arith.addi %13, %141 : vector<1x512xi32>
    %c0_i32_49 = arith.constant 0 : i32
    %143 = vector.broadcast %c0_i32_49 : i32 to vector<1x512xi32>
    %144 = arith.cmpi sge, %142, %143 : vector<1x512xi32>
    %145 = arith.andi %140, %144 : vector<1x512xi1>
    %c1_i32_50 = arith.constant 1 : i32
    %146 = vector.broadcast %c1_i32_50 : i32 to vector<1x512xi32>
    %147 = arith.addi %13, %146 : vector<1x512xi32>
    %c16_i32_51 = arith.constant 16 : i32
    %148 = vector.broadcast %c16_i32_51 : i32 to vector<1x512xi32>
    %149 = arith.cmpi slt, %147, %148 : vector<1x512xi32>
    %150 = arith.andi %145, %149 : vector<1x512xi1>
    %cst_52 = arith.constant 0.000000e+00 : f32
    %151 = vector.shape_cast %150 : vector<1x512xi1> to vector<1x512xi1>
    %152 = vector.broadcast %151 : vector<1x512xi1> to vector<4x512xi1>
    %153 = vector.broadcast %cst_52 : f32 to vector<4x512xf32>
    %154 = arith.select %152, %131, %153 : vector<4x512xi1>, vector<4x512xf32>
    %155 = vector.extract_strided_slice %0 {offsets = [0, 5], sizes = [4, 1], strides = [1, 1]} : vector<4x11xf32> to vector<4x1xf32>
    %156 = vector.broadcast %155 : vector<4x1xf32> to vector<4x512xf32>
    %157 = arith.mulf %154, %156 : vector<4x512xf32>
    %158 = arith.addf %130, %157 : vector<4x512xf32>
    %c497_i32 = arith.constant 497 : i32
    %159 = tpu.dynamic_rotate %10 by %c497_i32 dim 1 : vector<4x512xf32>, i32 -> vector<4x512xf32>
    %c1_i32_53 = arith.constant 1 : i32
    %160 = vector.broadcast %c1_i32_53 : i32 to vector<1x512xi32>
    %161 = arith.addi %12, %160 : vector<1x512xi32>
    %c0_i32_54 = arith.constant 0 : i32
    %162 = vector.broadcast %c0_i32_54 : i32 to vector<1x512xi32>
    %163 = arith.cmpi sge, %161, %162 : vector<1x512xi32>
    %c1_i32_55 = arith.constant 1 : i32
    %164 = vector.broadcast %c1_i32_55 : i32 to vector<1x512xi32>
    %165 = arith.addi %12, %164 : vector<1x512xi32>
    %c16_i32_56 = arith.constant 16 : i32
    %166 = vector.broadcast %c16_i32_56 : i32 to vector<1x512xi32>
    %167 = arith.cmpi slt, %165, %166 : vector<1x512xi32>
    %168 = arith.andi %163, %167 : vector<1x512xi1>
    %c-1_i32_57 = arith.constant -1 : i32
    %169 = vector.broadcast %c-1_i32_57 : i32 to vector<1x512xi32>
    %170 = arith.addi %13, %169 : vector<1x512xi32>
    %c0_i32_58 = arith.constant 0 : i32
    %171 = vector.broadcast %c0_i32_58 : i32 to vector<1x512xi32>
    %172 = arith.cmpi sge, %170, %171 : vector<1x512xi32>
    %173 = arith.andi %168, %172 : vector<1x512xi1>
    %c-1_i32_59 = arith.constant -1 : i32
    %174 = vector.broadcast %c-1_i32_59 : i32 to vector<1x512xi32>
    %175 = arith.addi %13, %174 : vector<1x512xi32>
    %c16_i32_60 = arith.constant 16 : i32
    %176 = vector.broadcast %c16_i32_60 : i32 to vector<1x512xi32>
    %177 = arith.cmpi slt, %175, %176 : vector<1x512xi32>
    %178 = arith.andi %173, %177 : vector<1x512xi1>
    %cst_61 = arith.constant 0.000000e+00 : f32
    %179 = vector.shape_cast %178 : vector<1x512xi1> to vector<1x512xi1>
    %180 = vector.broadcast %179 : vector<1x512xi1> to vector<4x512xi1>
    %181 = vector.broadcast %cst_61 : f32 to vector<4x512xf32>
    %182 = arith.select %180, %159, %181 : vector<4x512xi1>, vector<4x512xf32>
    %183 = vector.extract_strided_slice %0 {offsets = [0, 6], sizes = [4, 1], strides = [1, 1]} : vector<4x11xf32> to vector<4x1xf32>
    %184 = vector.broadcast %183 : vector<4x1xf32> to vector<4x512xf32>
    %185 = arith.mulf %182, %184 : vector<4x512xf32>
    %186 = arith.addf %158, %185 : vector<4x512xf32>
    %c496_i32 = arith.constant 496 : i32
    %187 = tpu.dynamic_rotate %10 by %c496_i32 dim 1 : vector<4x512xf32>, i32 -> vector<4x512xf32>
    %c1_i32_62 = arith.constant 1 : i32
    %188 = vector.broadcast %c1_i32_62 : i32 to vector<1x512xi32>
    %189 = arith.addi %12, %188 : vector<1x512xi32>
    %c0_i32_63 = arith.constant 0 : i32
    %190 = vector.broadcast %c0_i32_63 : i32 to vector<1x512xi32>
    %191 = arith.cmpi sge, %189, %190 : vector<1x512xi32>
    %c1_i32_64 = arith.constant 1 : i32
    %192 = vector.broadcast %c1_i32_64 : i32 to vector<1x512xi32>
    %193 = arith.addi %12, %192 : vector<1x512xi32>
    %c16_i32_65 = arith.constant 16 : i32
    %194 = vector.broadcast %c16_i32_65 : i32 to vector<1x512xi32>
    %195 = arith.cmpi slt, %193, %194 : vector<1x512xi32>
    %196 = arith.andi %191, %195 : vector<1x512xi1>
    %c0_i32_66 = arith.constant 0 : i32
    %197 = vector.broadcast %c0_i32_66 : i32 to vector<1x512xi32>
    %198 = arith.addi %13, %197 : vector<1x512xi32>
    %c0_i32_67 = arith.constant 0 : i32
    %199 = vector.broadcast %c0_i32_67 : i32 to vector<1x512xi32>
    %200 = arith.cmpi sge, %198, %199 : vector<1x512xi32>
    %201 = arith.andi %196, %200 : vector<1x512xi1>
    %c0_i32_68 = arith.constant 0 : i32
    %202 = vector.broadcast %c0_i32_68 : i32 to vector<1x512xi32>
    %203 = arith.addi %13, %202 : vector<1x512xi32>
    %c16_i32_69 = arith.constant 16 : i32
    %204 = vector.broadcast %c16_i32_69 : i32 to vector<1x512xi32>
    %205 = arith.cmpi slt, %203, %204 : vector<1x512xi32>
    %206 = arith.andi %201, %205 : vector<1x512xi1>
    %cst_70 = arith.constant 0.000000e+00 : f32
    %207 = vector.shape_cast %206 : vector<1x512xi1> to vector<1x512xi1>
    %208 = vector.broadcast %207 : vector<1x512xi1> to vector<4x512xi1>
    %209 = vector.broadcast %cst_70 : f32 to vector<4x512xf32>
    %210 = arith.select %208, %187, %209 : vector<4x512xi1>, vector<4x512xf32>
    %211 = vector.extract_strided_slice %0 {offsets = [0, 7], sizes = [4, 1], strides = [1, 1]} : vector<4x11xf32> to vector<4x1xf32>
    %212 = vector.broadcast %211 : vector<4x1xf32> to vector<4x512xf32>
    %213 = arith.mulf %210, %212 : vector<4x512xf32>
    %214 = arith.addf %186, %213 : vector<4x512xf32>
    %c495_i32 = arith.constant 495 : i32
    %215 = tpu.dynamic_rotate %10 by %c495_i32 dim 1 : vector<4x512xf32>, i32 -> vector<4x512xf32>
    %c1_i32_71 = arith.constant 1 : i32
    %216 = vector.broadcast %c1_i32_71 : i32 to vector<1x512xi32>
    %217 = arith.addi %12, %216 : vector<1x512xi32>
    %c0_i32_72 = arith.constant 0 : i32
    %218 = vector.broadcast %c0_i32_72 : i32 to vector<1x512xi32>
    %219 = arith.cmpi sge, %217, %218 : vector<1x512xi32>
    %c1_i32_73 = arith.constant 1 : i32
    %220 = vector.broadcast %c1_i32_73 : i32 to vector<1x512xi32>
    %221 = arith.addi %12, %220 : vector<1x512xi32>
    %c16_i32_74 = arith.constant 16 : i32
    %222 = vector.broadcast %c16_i32_74 : i32 to vector<1x512xi32>
    %223 = arith.cmpi slt, %221, %222 : vector<1x512xi32>
    %224 = arith.andi %219, %223 : vector<1x512xi1>
    %c1_i32_75 = arith.constant 1 : i32
    %225 = vector.broadcast %c1_i32_75 : i32 to vector<1x512xi32>
    %226 = arith.addi %13, %225 : vector<1x512xi32>
    %c0_i32_76 = arith.constant 0 : i32
    %227 = vector.broadcast %c0_i32_76 : i32 to vector<1x512xi32>
    %228 = arith.cmpi sge, %226, %227 : vector<1x512xi32>
    %229 = arith.andi %224, %228 : vector<1x512xi1>
    %c1_i32_77 = arith.constant 1 : i32
    %230 = vector.broadcast %c1_i32_77 : i32 to vector<1x512xi32>
    %231 = arith.addi %13, %230 : vector<1x512xi32>
    %c16_i32_78 = arith.constant 16 : i32
    %232 = vector.broadcast %c16_i32_78 : i32 to vector<1x512xi32>
    %233 = arith.cmpi slt, %231, %232 : vector<1x512xi32>
    %234 = arith.andi %229, %233 : vector<1x512xi1>
    %cst_79 = arith.constant 0.000000e+00 : f32
    %235 = vector.shape_cast %234 : vector<1x512xi1> to vector<1x512xi1>
    %236 = vector.broadcast %235 : vector<1x512xi1> to vector<4x512xi1>
    %237 = vector.broadcast %cst_79 : f32 to vector<4x512xf32>
    %238 = arith.select %236, %215, %237 : vector<4x512xi1>, vector<4x512xf32>
    %239 = vector.extract_strided_slice %0 {offsets = [0, 8], sizes = [4, 1], strides = [1, 1]} : vector<4x11xf32> to vector<4x1xf32>
    %240 = vector.broadcast %239 : vector<4x1xf32> to vector<4x512xf32>
    %241 = arith.mulf %238, %240 : vector<4x512xf32>
    %242 = arith.addf %214, %241 : vector<4x512xf32>
    %243 = vector.extract_strided_slice %0 {offsets = [0, 10], sizes = [4, 1], strides = [1, 1]} : vector<4x11xf32> to vector<4x1xf32>
    %244 = vector.broadcast %243 : vector<4x1xf32> to vector<4x512xf32>
    %245 = arith.addf %242, %244 : vector<4x512xf32>
    %cst_80 = arith.constant 0.000000e+00 : f32
    %246 = vector.broadcast %cst_80 : f32 to vector<4x512xf32>
    %247 = arith.maximumf %245, %246 : vector<4x512xf32>
    %c0_81 = arith.constant 0 : index
    %c0_82 = arith.constant 0 : index
    %248 = vector.load %arg5[%c0_81, %c0_82] : memref<16x4xbf16, #tpu.memory_space<vmem>>, vector<16x4xbf16>
    %249 = arith.truncf %247 : vector<4x512xf32> to vector<4x512xbf16>
    %cst_83 = arith.constant dense<0.000000e+00> : vector<16x512xf32>
    %250 = tpu.matmul %248, %249, %cst_83 {dimension_numbers = #tpu.dot_dimension_numbers<[1], [0], [0], [1], [0, 0, 1, 1], [], []>} : vector<16x4xbf16>, vector<4x512xbf16>, vector<16x512xf32> -> vector<16x512xf32>
    %c0_84 = arith.constant 0 : index
    %c0_85 = arith.constant 0 : index
    %251 = vector.load %arg6[%c0_84, %c0_85] : memref<16x1xf32, #tpu.memory_space<vmem>>, vector<16x1xf32>
    %252 = vector.broadcast %251 : vector<16x1xf32> to vector<16x512xf32>
    %253 = arith.addf %250, %252 : vector<16x512xf32>
    %c0_86 = arith.constant 0 : index
    %c0_87 = arith.constant 0 : index
    %c0_88 = arith.constant 0 : index
    %254 = vector.load %arg1[%c0_86, %c0_87, %c0_88] : memref<1x16x512xf32, #tpu.memory_space<vmem>>, vector<1x16x512xf32>
    %255 = vector.shape_cast %254 : vector<1x16x512xf32> to vector<16x512xf32>
    %256 = arith.addf %253, %255 : vector<16x512xf32>
    %cst_89 = arith.constant 0.000000e+00 : f32
    %257 = vector.broadcast %cst_89 : f32 to vector<16x512xf32>
    %258 = arith.maximumf %256, %257 : vector<16x512xf32>
    %c0_90 = arith.constant 0 : index
    %c0_91 = arith.constant 0 : index
    %c0_92 = arith.constant 0 : index
    %259 = vector.load %arg7[%c0_90, %c0_91, %c0_92] : memref<1x16x512xf32, #tpu.memory_space<vmem>>, vector<1x16x512xf32>
    %260 = vector.shape_cast %259 : vector<1x16x512xf32> to vector<16x512xf32>
    %261 = vector.shape_cast %258 : vector<16x512xf32> to vector<1x16x512xf32>
    tpu.vector_store %arg7[%c0_90, %c0_91, %c0_92], %261 {strides = array<i32>} : memref<1x16x512xf32, #tpu.memory_space<vmem>>, vector<1x16x512xf32>,
    return
  }
  func.func @transform_0(%arg0: i32) -> (i32, i32, i32) {
    %c0_i32 = arith.constant 0 : i32
    %c0_i32_0 = arith.constant 0 : i32
    %c0_i32_1 = arith.constant 0 : i32
    return %arg0, %c0_i32, %c0_i32_0 : i32, i32, i32
  }
  func.func @transform_1(%arg0: i32) -> (i32, i32) {
    %c0_i32 = arith.constant 0 : i32
    %c0_i32_0 = arith.constant 0 : i32
    %c0_i32_1 = arith.constant 0 : i32
    return %c0_i32, %c0_i32_0 : i32, i32
  }
  func.func @transform_2(%arg0: i32) -> (i32, i32) {
    %c0_i32 = arith.constant 0 : i32
    %c0_i32_0 = arith.constant 0 : i32
    %c0_i32_1 = arith.constant 0 : i32
    return %c0_i32, %c0_i32_0 : i32, i32
  }
  func.func @transform_3(%arg0: i32) -> (i32, i32) {
    %c0_i32 = arith.constant 0 : i32
    %c0_i32_0 = arith.constant 0 : i32
    %c0_i32_1 = arith.constant 0 : i32
    return %c0_i32, %c0_i32_0 : i32, i32
  }
  func.func @transform_4(%arg0: i32) -> (i32, i32) {
    %c0_i32 = arith.constant 0 : i32
    %c0_i32_0 = arith.constant 0 : i32
    %c0_i32_1 = arith.constant 0 : i32
    return %c0_i32, %c0_i32_0 : i32, i32
  }
  func.func @transform_5(%arg0: i32) -> (i32, i32) {
    %c0_i32 = arith.constant 0 : i32
    %c0_i32_0 = arith.constant 0 : i32
    %c0_i32_1 = arith.constant 0 : i32
    return %c0_i32, %c0_i32_0 : i32, i32
  }
  func.func @transform_6(%arg0: i32) -> (i32, i32, i32) {
    %c0_i32 = arith.constant 0 : i32
    %c0_i32_0 = arith.constant 0 : i32
    %c0_i32_1 = arith.constant 0 : i32
    return %arg0, %c0_i32, %c0_i32_0 : i32, i32, i32
  }
}

</mosaic_0001>

<bundles_post_ra>
// kernel: tpu_custom_call.1
= control target key start
LH: loop header
LB: loop body
LE: loop exit
PB: predicated region body
PF: predicated region fallthrough
CT: control target
= control target key end

     0   :  { %11 = vsyncpa [#allocation3], 0  ;;  %s1774_s0 = inlined_call_operand.hbm [shape: f32[1,16,512], index: 0, kind: input, shape index: {}]   ;;  %s1775_s1 = inlined_call_operand.vmem [shape: bf16[4,16], index: 1, kind: input, shape index: {}]   ;;  %s1776_s2 = inlined_call_operand.vmem [shape: f32[4,11], index: 2, kind: input, shape index: {}]   ;;  %s1777_s3 = inlined_call_operand.vmem [shape: s32[2,512], index: 3, kind: input, shape index: {}]   ;;  %s1778_s4 = inlined_call_operand.vmem [shape: bf16[16,4], index: 4, kind: input, shape index: {}]   ;;  %s1779_s5 = inlined_call_operand.vmem [shape: f32[16,1], index: 5, kind: input, shape index: {}]   ;;  %s1780_s6 = inlined_call_operand.hbm [shape: f32[1,16,512], index: 6, kind: output, shape index: {}]  }
   0x1   :  { %12 = vsyncpa [#allocation4], 0  ;;  %s1016_s21 = smov [#allocation2]  }
   0x2   :  { %s18_s22 = sshll.u32 %s1016_s21, 4  ;;  %s19_s22 = int_to_ptr.vmem [resolvable:$true] %s18_s22 }
   0x3   :  { %s980_s23 = scalar_lea.vmem %s19_s22, 1024  ;;  %p985_p1 = scmp.lt.s32.totalorder %s19_s22, %s19_s22 }
   0x4   :  { %p981_p0 = scmp.ne.s32.totalorder %s19_s22, %s980_s23  ;;  %p986_p2 = scmp.lt.s32.totalorder %s980_s23, %s980_s23 }
   0x6   :  { %p987_p3 = por %p986_p2, %p985_p1 }
   0x8   :  { %p988_p4 = pnand %p987_p3, %p981_p0 }
   0xa   :  { %991 = shalt.err (!%p988_p4)
}
   0xb   :  { %s1017_s24 = smov 512   ;;  %s1018_s25 = smov 32  }
   0xc   :  { %24 = dma.hbm_to_vmem [thread:$0]  %s1774_s0, 1024, %s19_s22, [#allocation3], %s1017_s24, %s1017_s24, %s1018_s25  }
   0xd   :  { %1012 = dma.done.wait [#allocation3], 1024  }
   0xe   :  { %1013 = vsyncadd [#allocation3], 4294966272  ;;  %v1781_v0 = vmov 0   ;;  %v1020_v1 = vmov 9   ;;  %v1021_v2 = vmov 1   ;;  %v1082_v3 = vld [vmem:[#allocation2 + $0x8] sm:$0xff] }
   0xf   :  { %94 = vmatprep.mubr.bf16.mxu0 %v1781_v0  ;;  %135 = vmatprep.mubr.bf16.mxu1 %v1781_v0  ;;  %1798 = vst [vmem:[#allocation8_spill] sm:$0xff] %v1082_v3  ;;  %v1084_v4 = vld [vmem:[#allocation2 + $0x28] sm:$0xff]  ;;  %v1086_v5 = vld [vmem:[#allocation2 + $0x18] sm:$0xff]  ;;  %v1090_v8 = vld [vmem:[#allocation2] sm:$0xff]  ;;  %vm58_vm0 = vcmask 130048   ;;  %v1022_v17 = vmov 2  }
  0x10   :  { %957 = vset.pattern.permute.xlu0 %v1020_v1  ;;  %959 = vset.pattern.permute.xlu1 %v1021_v2  ;;  %1799 = vst [vmem:[#allocation9_spill] sm:$0xff] %v1084_v4  ;;  %1800 = vst [vmem:[#allocation10_spill] sm:$0xff] %v1086_v5  ;;  %v50_v6 = vpack.c.bf16 %v1084_v4, %v1082_v3  ;;  %v48_v7 = vld [vmem:[#allocation2 + $0x38] sm:$0xff]  ;;  %v1092_v9 = vld [vmem:[#allocation2 + $0x20] sm:$0xff]  ;;  %v1023_v18 = vmov 4   ;;  %v1024_v19 = vmov 3  }
  0x11   :  { %1801 = vst [vmem:[#allocation11_spill] sm:$0xff] %v1090_v8  ;;  %1802 = vst [vmem:[#allocation12_spill] sm:$0xff] %v1092_v9  ;;  %v52_v10 = vpack.c.bf16 %v48_v7, %v1086_v5  ;;  %v49_v11 = vpack.c.bf16 %v1092_v9, %v1090_v8  ;;  %v1097_v12 = vld [vmem:[#allocation2 + $0x10] sm:$0xff]  ;;  %v1106_v15 = vld [vmem:[%s1776_s2] sm:$0xf]  ;;  %v1025_v20 = vmov 5  }
  0x12   :  { %1803 = vst [vmem:[#allocation13_spill] sm:$0xff] %v1097_v12  ;;  %v1099_v13 = vld [vmem:[#allocation2 + $0x30] sm:$0xff]  ;;  %76 = vmatprep.subr.bf16.mxu0 %v50_v6  ;;  %v40_v16 = vld [vmem:[%s1775_s1] sm:$0x3]  ;;  %55 = vperm.xlu0 %957, %v1106_v15   ;;  %v1026_v21 = vmov 6   ;;  %v1027_v22 = vmov 8  }
  0x13   :  { %1804 = vst [vmem:[#allocation14_spill] sm:$0xff] %v1099_v13  ;;  %v51_v14 = vpack.c.bf16 %v1099_v13, %v1097_v12  ;;  %117 = vmatprep.subr.bf16.mxu1 %v52_v10  ;;  %77 = vmatpush1.bf16.msra.mxu0 %v49_v11  ;;  %v1028_v23 = vmov 7   ;;  %v1029_v24 = vmov 10   ;;  %s1030_s1 = smov 15   ;;  %s1031_s2 = smov 17   ;;  %v760_v45 = vld [vmem:[%s1779_s5] sm:$0xff] }
  0x14   :  { %298 = vperm.xlu1 %959, %v1106_v15   ;;  %s1032_s7 = smov 1   ;;  %s1033_s8 = smov 16   ;;  %v761_v46 = vld [vmem:[%s1779_s5 + $0x8] sm:$0xff]  ;;  %v148_v50 = vld [vmem:[%s1777_s3] sm:$0xff] }
  0x15   :  { %118 = vmatpush1.bf16.msra.mxu1 %v51_v14  ;;  %s1034_s9 = smov 113   ;;  %s1035_s10 = smov 112   ;;  %v164_v51 = vadd.s32 4294967295, %v148_v50  ;;  %v322_v54 = vadd.s32 1, %v148_v50  ;;  %vm244_vm4 = vcmp.ge.s32.totalorder %v148_v50, 0  ;;  %vm250_vm6 = vcmp.lt.s32.totalorder %v148_v50, 16 }
  0x16   :  { %921 = vmatmul.mubr.msk.bf16.vlgmr.msra.gmra.mxu0 %vm58_vm0, %v40_v16  ;;  %958 = vset.pattern.permute.xlu0 %v1781_v0  ;;  %s1036_s11 = smov 127   ;;  %s1037_s12 = smov 111   ;;  %v245_v1 = vsel %vm244_vm4, 1, %v1781_v0  ;;  %v251_v14 = vsel %vm250_vm6, 1, %v1781_v0 }
  0x17   :  { %826 = vmatprep.mubr.bf16.mxu0 %v1781_v0  ;;  %220 = vperm.xlu0 %958, %v1106_v15   ;;  %vm165_vm1 = vcmp.ge.s32.totalorder %v164_v51, 0  ;;  %vm166_vm2 = vcmp.lt.s32.totalorder %v164_v51, 16  ;;  %vm323_vm3 = vcmp.ge.s32.totalorder %v322_v54, 0  ;;  %vm329_vm5 = vcmp.lt.s32.totalorder %v322_v54, 16 }
  0x18   :  { %922 = vmatmul.mubr.msk.bf16.vlgmr.msra.gmra.mxu1 %vm58_vm0, %v40_v16  ;;  %960 = vset.pattern.permute.xlu1 %v1022_v17  ;;  %v168_v57 = vsel %vm165_vm1, 1, %v1781_v0  ;;  %v173_v59 = vsel %vm166_vm2, 1, %v1781_v0  ;;  %v324_v60 = vsel %vm323_vm3, 1, %v1781_v0  ;;  %vm1203_vm7 = vmand %vm165_vm1, %vm166_vm2  ;;  %v330_v10 = vsel %vm329_vm5, 1, %v1781_v0 }
  0x19   :  { %869 = vmatprep.mubr.bf16.mxu1 %v1781_v0  ;;  %377 = vperm.xlu1 %960, %v1106_v15   ;;  %v923_v58 = vrot.slane %v168_v57, 9  ;;  %v924_v63 = vrot.slane %v173_v59, 9  ;;  %v927_v7 = vrot.slane %v324_v60, 9  ;;  %v925_v11 = vrot.slane %v245_v1, 9  ;;  %vm1255_vm0 = vmand %vm244_vm4, %vm250_vm6 }
  0x1b   :  { %962 = vset.pattern.permute.xlu0 %v1023_v18  ;;  %vm1207_vm8 = vcmp.ne.s32.totalorder %v923_v58, 0  ;;  %vm1223_vm10 = vcmp.ne.s32.totalorder %v924_v63, 0  ;;  %v928_v18 = vrot.slane %v330_v10, 9  ;;  %vm1227_vm11 = vcmp.ne.s32.totalorder %v927_v7, 0 }
  0x1c   :  { %458 = vperm.xlu0 %962, %v1106_v15   ;;  %vm172_vm9 = vmand %vm1203_vm7, %vm1207_vm8  ;;  %vm1237_vm13 = vcmp.ne.s32.totalorder %v925_v11, 0 }
  0x1d   :  { %961 = vset.pattern.permute.xlu1 %v1024_v19  ;;  %v157_v19 = vlaneseq  ;;  %vm1233_vm12 = vmand %vm172_vm9, %vm1223_vm10  ;;  %vm1249_vm15 = vcmp.ne.s32.totalorder %v928_v18, 0 }
  0x1e   :  { %446 = vperm.xlu1 %961, %v1106_v15   ;;  %vm328_vm14 = vmand %vm1203_vm7, %vm1227_vm11 }
  0x1f   :  { %vm249_vm1 = vmand %vm1203_vm7, %vm1237_vm13  ;;  %v1318_v58 = vand.u32 127, %v157_v19 }
  0x20   :  { %963 = vset.pattern.permute.xlu0 %v1025_v20  ;;  %vm334_vm9 = vmand %vm328_vm14, %vm1249_vm15 }
  0x21   :  { %526 = vperm.xlu0 %963, %v1106_v15   ;;  %vm402_vm4 = vmand %vm1255_vm0, %vm1207_vm8 }
  0x22   :  { %964 = vset.pattern.permute.xlu1 %v1026_v21  ;;  %v926_v21 = vrot.slane %v251_v14, 9  ;;  %vm1288_vm7 = vmand %vm323_vm3, %vm329_vm5 }
  0x23   :  { %595 = vperm.xlu1 %964, %v1106_v15   ;;  %vm1295_vm14 = vmand %vm402_vm4, %vm1223_vm10 }
  0x24   :  { %vm1263_vm2 = vcmp.ne.s32.totalorder %v926_v21, 0  ;;  %vm482_vm3 = vmand %vm1255_vm0, %vm1227_vm11 }
  0x25   :  { %966 = vset.pattern.permute.xlu0 %v1027_v22  ;;  %vm255_vm6 = vmand %vm249_vm1, %vm1263_vm2 }
  0x26   :  { %731 = vperm.xlu0 %966, %v1106_v15   ;;  %v256_v50 = vsel %vm255_vm6, 1, %v1781_v0  ;;  %vm551_vm5 = vmand %vm1288_vm7, %vm1207_vm8 }
  0x27   :  { %965 = vset.pattern.permute.xlu1 %v1028_v23  ;;  %vm1355_vm0 = vmand %vm551_vm5, %vm1223_vm10  ;;  %vm159_vm10 = vcmp.lt.s32.totalorder %v1318_v58, 17  ;;  %vm239_vm5 = vcmp.lt.s32.totalorder %v1318_v58, 16 }
  0x28   :  { %663 = vperm.xlu1 %965, %v1106_v15   ;;  %vm619_vm8 = vmand %vm1288_vm7, %vm1237_vm13  ;;  %v553_v23 = vsel %vm1355_vm0, 1, %v1781_v0 }
  0x29   :  { %vm687_vm1 = vmand %vm1288_vm7, %vm1227_vm11 }
  0x2a   :  { %967 = vset.pattern.permute.xlu0 %v1029_v24  ;;  %vm1418_vm4 = vmand %vm619_vm8, %vm1263_vm2 }
  0x2b   :  { %vm1439_vm13 = vmand %vm687_vm1, %vm1249_vm15 }
  0x2c   :  { %968 = vset.pattern.permute.xlu1 %v1781_v0 }
  0x8d   :  { %v56_v25 = vpop.permute.xlu0 %55 }
  0x8f   :  { %v1174_v47 = vpop.permute.xlu1 %298 }
  0x92   :  { %v1125_v26 = vpop.permute.xlu0 %220 }
  0x94   :  { %v1176_v48 = vpop.permute.xlu1 %377 }
  0x97   :  { %v1129_v34 = vpop.permute.xlu0 %458 }
  0x99   :  { %v1178_v49 = vpop.permute.xlu1 %446 }
  0x9c   :  { %v1185_v53 = vpop.permute.xlu0 %526 }
  0x9e   :  { %v1183_v52 = vpop.permute.xlu1 %595 }
  0x9f   :  { %1806 = vst [vmem:[#allocation16_spill] sm:$0xff] %v1183_v52 }
  0xa1   :  { %v1189_v56 = vpop.permute.xlu0 %731 }
  0xa2   :  { %1808 = vst [vmem:[#allocation18_spill] sm:$0xff] %v1189_v56 }
  0xa3   :  { %v1187_v55 = vpop.permute.xlu1 %663 }
  0xa4   :  { %1807 = vst [vmem:[#allocation17_spill] sm:$0xff] %v1187_v55 }
  0xd6   :  { %v96_v27 = vpop.f32.mrf.mxu0 }
  0xd7   :  { %v97_v28 = vadd.f32 %v96_v27, %v56_v25 }
  0xd8   :  { %v137_v29 = vpop.f32.mrf.mxu1  ;;  %v98_v31 = vpop.f32.mrf.mxu0 }
  0xd9   :  { %v138_v30 = vadd.f32 %v137_v29, %v56_v25  ;;  %v1127_v32 = vmax.f32 %v97_v28, 0.0  ;;  %v99_v41 = vadd.f32 %v98_v31, %v56_v25  ;;  %v180_v28 = vshrl.u32 %v157_v19, 7 }
  0xda   :  { %v139_v33 = vpop.f32.mrf.mxu1  ;;  %v100_v36 = vpop.f32.mrf.mxu0  ;;  %v404_v19 = vsel %vm1295_vm14, 1, %v1781_v0 }
  0xdb   :  { %v146_v35 = vmax.f32 %v138_v30, 0.0  ;;  %309 = vrot.lane.b32.xlu0 %v1127_v32, %s1030_s1  ;;  %149 = vrot.lane.b32.xlu1 %v1127_v32, %s1031_s2  ;;  %v1143_v42 = vmax.f32 %v99_v41, 0.0  ;;  %v140_v43 = vadd.f32 %v139_v33, %v56_v25  ;;  %v1279_v36 = vsub.s32 4, %v180_v28 }
  0xdc   :  { %v141_v37 = vpop.f32.mrf.mxu1  ;;  %v101_v39 = vpop.f32.mrf.mxu0  ;;  %v1310_v51 = vsub.s32 0, %v180_v28  ;;  %v1324_v63 = vmul.f32 %v1129_v34, %v1127_v32 }
  0xdd   :  { %v1135_v38 = vmul.f32 %v1129_v34, %v146_v35  ;;  %v1147_v44 = vmax.f32 %v140_v43, 0.0  ;;  %v178_v37 = vsel %vm1233_vm12, 1, %v1781_v0  ;;  %v1328_v1 = vmul.f32 %v1129_v34, %v1143_v42  ;;  %vm1334_vm12 = vmand %vm482_vm3, %vm1249_vm15 }
  0xde   :  { %v142_v40 = vpop.f32.mrf.mxu1  ;;  %v190_v57 = vrot.slane %v178_v37, %v1279_v36  ;;  %1832 = vst [vmem:[#allocation20_spill] sm:$0xff] %v1324_v63  ;;  %v268_v7 = vrot.slane %v256_v50, %v1279_v36  ;;  %v408_v30 = vrot.slane %v404_v19, %v1310_v51  ;;  %v557_v5 = vrot.slane %v553_v23, %v1310_v51 }
  0xdf   :  { %1805 = vst [vmem:[#allocation15_spill] sm:$0xff] %v1135_v38  ;;  %313 = vrot.lane.b32.xlu0 %v146_v35, %s1030_s1  ;;  %153 = vrot.lane.b32.xlu1 %v146_v35, %s1031_s2  ;;  %v335_v40 = vsel %vm334_vm9, 1, %v1781_v0  ;;  %v1361_v22 = vmul.f32 %v1129_v34, %v1147_v44  ;;  %vm317_vm9 = vcmp.lt.s32.totalorder %v1318_v58, 15  ;;  %v565_v8 = vrot.slane %v553_v23, %v1279_v36 }
  0xe0   :  { %v347_v60 = vrot.slane %v335_v40, %v1279_v36  ;;  %v1367_v29 = vrot.slane %v190_v57, %v1310_v51  ;;  %v1391_v41 = vrot.slane %v268_v7, %v1310_v51  ;;  %v484_v57 = vsel %vm1334_vm12, 1, %v1781_v0 }
  0xe1   :  { %1838 = vst [vmem:[#allocation22_spill] sm:$0xff] %v1361_v22  ;;  %v488_v20 = vrot.slane %v484_v57, %v1310_v51  ;;  %v496_v13 = vrot.slane %v484_v57, %v1279_v36  ;;  %v1480_v3 = vrot.slane %v408_v30, %v1310_v51 }
  0xe2   :  { %v1379_v34 = vrot.slane %v347_v60, %v1310_v51  ;;  %vm213_vm14 = vcmp.eq.s32.totalorder %v1367_v29, 1  ;;  %vm291_vm15 = vcmp.eq.s32.totalorder %v1391_v41, 1 }
  0xe3   :  { %392 = vrot.lane.b32.xlu0 %v146_v35, %s1032_s7  ;;  %231 = vrot.lane.b32.xlu1 %v1127_v32, %s1033_s8  ;;  %v1510_v22 = vrot.slane %v496_v13, %v1310_v51 }
  0xe4   :  { %vm370_vm3 = vcmp.eq.s32.totalorder %v1379_v34, 1 }
  0xe7   :  { %537 = vrot.lane.b32.xlu0 %v1127_v32, %s1034_s9  ;;  %235 = vrot.lane.b32.xlu1 %v146_v35, %s1033_s8 }
  0xeb   :  { %541 = vrot.lane.b32.xlu0 %v146_v35, %s1034_s9  ;;  %388 = vrot.lane.b32.xlu1 %v1127_v32, %s1032_s7 }
  0xef   :  { %610 = vrot.lane.b32.xlu0 %v146_v35, %s1035_s10  ;;  %469 = vrot.lane.b32.xlu1 %v1127_v32, %s1036_s11 }
  0xf3   :  { %674 = vrot.lane.b32.xlu0 %v1127_v32, %s1037_s12  ;;  %473 = vrot.lane.b32.xlu1 %v146_v35, %s1036_s11 }
  0xf7   :  { %151 = vrot.lane.b32.xlu0 %v1143_v42, %s1031_s2  ;;  %606 = vrot.lane.b32.xlu1 %v1127_v32, %s1035_s10  ;;  %v182_v32 = vrot.slane %v178_v37, %v1310_v51 }
  0xf9   :  { %v1403_v60 = vrot.slane %v182_v32, %v1310_v51 }
  0xfb   :  { %155 = vrot.lane.b32.xlu0 %v1147_v44, %s1031_s2  ;;  %311 = vrot.lane.b32.xlu1 %v1143_v42, %s1030_s1  ;;  %vm211_vm7 = vcmp.eq.s32.totalorder %v1403_v60, 1 }
  0xff   :  { %233 = vrot.lane.b32.xlu0 %v1143_v42, %s1033_s8  ;;  %315 = vrot.lane.b32.xlu1 %v1147_v44, %s1030_s1 }
 0x103   :  { %237 = vrot.lane.b32.xlu0 %v1147_v44, %s1033_s8  ;;  %390 = vrot.lane.b32.xlu1 %v1143_v42, %s1032_s7 }
 0x107   :  { %471 = vrot.lane.b32.xlu0 %v1143_v42, %s1036_s11  ;;  %394 = vrot.lane.b32.xlu1 %v1147_v44, %s1032_s7 }
 0x10b   :  { %475 = vrot.lane.b32.xlu0 %v1147_v44, %s1036_s11  ;;  %539 = vrot.lane.b32.xlu1 %v1143_v42, %s1034_s9 }
 0x10f   :  { %678 = vrot.lane.b32.xlu0 %v146_v35, %s1037_s12  ;;  %543 = vrot.lane.b32.xlu1 %v1147_v44, %s1034_s9  ;;  %v1277_v35 = vsub.s32 2, %v180_v28 }
 0x111   :  { %v186_v54 = vrot.slane %v178_v37, %v1277_v35  ;;  %v343_v59 = vrot.slane %v335_v40, %v1277_v35  ;;  %v264_v2 = vrot.slane %v256_v50, %v1277_v35  ;;  %v561_v9 = vrot.slane %v553_v23, %v1277_v35 }
 0x113   :  { %608 = vrot.lane.b32.xlu1 %v1143_v42, %s1035_s10  ;;  %743 = vperm.xlu0 %967, %v1106_v15   ;;  %v1376_v6 = vrot.slane %v343_v59, %v1310_v51 }
 0x115   :  { %vm369_vm2 = vcmp.eq.s32.totalorder %v1376_v6, 1 }
 0x117   :  { %612 = vrot.lane.b32.xlu1 %v1147_v44, %s1035_s10  ;;  %969 = vset.pattern.permute.xlu0 %v1781_v0  ;;  %v492_v0 = vrot.slane %v484_v57, %v1277_v35 }
 0x11b   :  { %676 = vrot.lane.b32.xlu1 %v1143_v42, %s1037_s12  ;;  %v339_v42 = vrot.slane %v335_v40, %v1310_v51 }
 0x11d   :  { %v1409_v7 = vrot.slane %v339_v42, %v1310_v51  ;;  %v1491_v42 = vrot.slane %v488_v20, %v1310_v51  ;;  %v1504_v20 = vrot.slane %v557_v5, %v1310_v51  ;;  %v1524_v5 = vrot.slane %v565_v8, %v1310_v51 }
 0x11f   :  { %680 = vrot.lane.b32.xlu1 %v1147_v44, %s1037_s12  ;;  %v260_v44 = vrot.slane %v256_v50, %v1310_v51  ;;  %vm368_vm0 = vcmp.eq.s32.totalorder %v1409_v7, 1 }
 0x121   :  { %v1447_v21 = vrot.slane %v260_v44, %v1310_v51  ;;  %v1844_v44 = vmov 0  }
 0x122   :  { %v1473_v12 = vsel %vm1439_vm13, 1, %v1844_v44 }
 0x123   :  { %764 = vperm.xlu1 %968, %v760_v45   ;;  %vm289_vm13 = vcmp.eq.s32.totalorder %v1447_v21, 1  ;;  %v697_v63 = vrot.slane %v1473_v12, %v1277_v35 }
 0x127   :  { %769 = vperm.xlu1 %968, %v761_v46   ;;  %v1303_v46 = vsub.s32 6, %v180_v28  ;;  %v1364_v28 = vrot.slane %v186_v54, %v1310_v51  ;;  %v412_v54 = vrot.slane %v404_v19, %v1277_v35 }
 0x129   :  { %v194_v18 = vrot.slane %v178_v37, %v1303_v46  ;;  %v351_v17 = vrot.slane %v335_v40, %v1303_v46  ;;  %v272_v37 = vrot.slane %v256_v50, %v1303_v46  ;;  %v1388_v40 = vrot.slane %v264_v2, %v1310_v51 }
 0x12a   :  { %vm212_vm6 = vcmp.eq.s32.totalorder %v1364_v28, 1  ;;  %v420_v39 = vrot.slane %v404_v19, %v1303_v46  ;;  %v569_v56 = vrot.slane %v553_v23, %v1303_v46  ;;  %v1497_v23 = vrot.slane %v492_v0, %v1310_v51 }
 0x12b   :  { %v1406_v2 = vrot.slane %v194_v18, %v1310_v51  ;;  %v1425_v32 = vrot.slane %v351_v17, %v1310_v51  ;;  %v416_v18 = vrot.slane %v404_v19, %v1279_v36  ;;  %v1450_v27 = vrot.slane %v272_v37, %v1310_v51 }
 0x12c   :  { %vm290_vm11 = vcmp.eq.s32.totalorder %v1388_v40, 1  ;;  %v1457_v17 = vrot.slane %v412_v54, %v1310_v51  ;;  %v621_v37 = vsel %vm1418_vm4, 1, %v1844_v44  ;;  %v500_v54 = vrot.slane %v484_v57, %v1303_v46 }
 0x12d   :  { %vm214_vm12 = vcmp.eq.s32.totalorder %v1406_v2, 1  ;;  %v1477_v10 = vrot.slane %v416_v18, %v1310_v51  ;;  %vm371_vm8 = vcmp.eq.s32.totalorder %v1425_v32, 1  ;;  %v1488_v57 = vrot.slane %v420_v39, %v1310_v51 }
 0x12e   :  { %v625_v18 = vrot.slane %v621_v37, %v1310_v51  ;;  %v629_v30 = vrot.slane %v621_v37, %v1277_v35  ;;  %v633_v44 = vrot.slane %v621_v37, %v1279_v36  ;;  %v693_v39 = vrot.slane %v1473_v12, %v1310_v51 }
 0x12f   :  { %v1513_v0 = vrot.slane %v500_v54, %v1310_v51  ;;  %vm437_vm4 = vcmp.eq.s32.totalorder %v1480_v3, 1  ;;  %vm440_vm1 = vcmp.eq.s32.totalorder %v1488_v57, 1 }
 0x130   :  { %v1540_v52 = vrot.slane %v629_v30, %v1310_v51  ;;  %v1544_v8 = vrot.slane %v633_v44, %v1310_v51 }
 0x14d   :  { %v1196_v61 = vpop.permute.xlu1 %149  ;;  %v1198_v62 = vpop.permute.xlu0 %309 }
 0x151   :  { %v1215_v15 = vpop.permute.xlu1 %153  ;;  %v1217_v16 = vpop.permute.xlu0 %313 }
 0x155   :  { %v1241_v24 = vpop.permute.xlu1 %231  ;;  %v1243_v25 = vpop.permute.xlu0 %392 }
 0x159   :  { %v1269_v31 = vpop.permute.xlu1 %235  ;;  %v1271_v33 = vpop.permute.xlu0 %537 }
 0x15a   :  { %1827 = vst [vmem:[#allocation19_spill] sm:$0xff] %v1271_v33 }
 0x15d   :  { %v1299_v43 = vpop.permute.xlu1 %388  ;;  %v1301_v45 = vpop.permute.xlu0 %541 }
 0x161   :  { %v1338_v11 = vpop.permute.xlu1 %469  ;;  %v1340_v14 = vpop.permute.xlu0 %610 }
 0x162   :  { %1835 = vst [vmem:[#allocation21_spill] sm:$0xff] %v1340_v14  ;;  %v1507_v14 = vrot.slane %v561_v9, %v1310_v51  ;;  %v1527_v9 = vrot.slane %v569_v56, %v1310_v51 }
 0x165   :  { %v1397_v59 = vpop.permute.xlu1 %473  ;;  %v1399_v50 = vpop.permute.xlu0 %674 }
 0x166   :  { %1839 = vst [vmem:[#allocation23_spill] sm:$0xff] %v1399_v50  ;;  %v637_v50 = vrot.slane %v621_v37, %v1303_v46 }
 0x168   :  { %v1547_v56 = vrot.slane %v637_v50, %v1310_v51 }
 0x169   :  { %v1464_v4 = vpop.permute.xlu1 %606  ;;  %v152_v19 = vpop.permute.xlu0 %151 }
 0x16a   :  { %1845 = vst [vmem:[#allocation24_spill] sm:$0xff] %v1464_v4  ;;  %v161_v37 = vsel %vm159_vm10, %v152_v19, %v1215_v15  ;;  %v162_v38 = vsel %vm159_vm10, %v1196_v61, %v152_v19  ;;  %v1537_v19 = vrot.slane %v625_v18, %v1310_v51  ;;  %1846 = vst [vmem:[#allocation25_spill] sm:$0xff] %v1547_v56 }
 0x16b   :  { %v216_v18 = vsel %vm212_vm6, %v162_v38, 0.0  ;;  %v217_v30 = vsel %vm213_vm14, %v161_v37, 0.0  ;;  %vm545_vm6 = vcmp.lt.s32.totalorder %v1318_v58, 113  ;;  %vm587_vm14 = vcmp.eq.s32.totalorder %v1507_v14, 1 }
 0x16c   :  { %v225_v37 = vmul.f32 %v1125_v26, %v217_v30  ;;  %v713_v14 = vrot.slane %v697_v63, %v1310_v51 }
 0x16d   :  { %v312_v55 = vpop.permute.xlu1 %311  ;;  %v156_v4 = vpop.permute.xlu0 %155 }
 0x16e   :  { %v319_v13 = vsel %vm317_vm9, %v312_v55, %v1217_v16  ;;  %v320_v54 = vsel %vm317_vm9, %v1198_v62, %v312_v55  ;;  %v1552_v55 = vrot.slane %v693_v39, %v1310_v51  ;;  %v160_v44 = vsel %vm159_vm10, %v1215_v15, %v156_v4 }
 0x16f   :  { %v163_v50 = vsel %vm159_vm10, %v156_v4, %v1196_v61  ;;  %v373_v38 = vsel %vm369_vm2, %v320_v54, 0.0  ;;  %v374_v28 = vsel %vm370_vm3, %v319_v13, 0.0  ;;  %vm518_vm10 = vcmp.eq.s32.totalorder %v1497_v23, 1 }
 0x170   :  { %v224_v39 = vmul.f32 %v1125_v26, %v216_v18  ;;  %v215_v13 = vsel %vm211_vm7, %v163_v50, 0.0  ;;  %v218_v40 = vsel %vm214_vm12, %v160_v44, 0.0  ;;  %vm1847_vm2 = vcmp.lt.s32.totalorder %v1318_v58, 1 }
 0x171   :  { %v316_v33 = vpop.permute.xlu1 %315  ;;  %v234_v56 = vpop.permute.xlu0 %233  ;;  %vm1848_vm3 = vmmov %vm1847_vm2  ;;  %vm520_vm7 = vcmp.eq.s32.totalorder %v1513_v0, 1  ;;  %vm1850_vm12 = vcmp.eq.s32.totalorder %v1450_v27, 1 }
 0x172   :  { %v241_v15 = vsel %vm239_vm5, %v234_v56, %v1269_v31  ;;  %v242_v4 = vsel %vm239_vm5, %v1241_v24, %v234_v56  ;;  %v318_v61 = vsel %vm317_vm9, %v1217_v16, %v316_v33  ;;  %v321_v29 = vsel %vm317_vm9, %v316_v33, %v1198_v62 }
 0x173   :  { %v294_v6 = vsel %vm290_vm11, %v242_v4, 0.0  ;;  %v295_v34 = vsel %vm291_vm15, %v241_v15, 0.0  ;;  %v381_v62 = vmul.f32 %v1176_v48, %v373_v38  ;;  %v382_v33 = vmul.f32 %v1176_v48, %v374_v28 }
 0x174   :  { %v302_v16 = vmul.f32 %v1174_v47, %v294_v6  ;;  %v303_v41 = vmul.f32 %v1174_v47, %v295_v34  ;;  %vm517_vm9 = vcmp.eq.s32.totalorder %v1491_v42, 1  ;;  %v372_v60 = vsel %vm368_vm0, %v321_v29, 0.0 }
 0x175   :  { %v391_v54 = vpop.permute.xlu1 %390  ;;  %v238_v56 = vpop.permute.xlu0 %237  ;;  %v375_v18 = vsel %vm371_vm8, %v318_v61, 0.0  ;;  %vm1849_vm11 = vcmp.eq.s32.totalorder %v1457_v17, 1  ;;  %vm519_vm15 = vcmp.eq.s32.totalorder %v1510_v22, 1  ;;  %v223_v38 = vmul.f32 %v1125_v26, %v215_v13 }
 0x176   :  { %v306_v30 = vadd.f32 %v302_v16, %v224_v39  ;;  %v399_v2 = vsel %vm1847_vm2, %v1299_v43, %v391_v54  ;;  %v398_v44 = vsel %vm1848_vm3, %v391_v54, %v1243_v25  ;;  %v240_v7 = vsel %vm239_vm5, %v1269_v31, %v238_v56  ;;  %vm1852_vm3 = vmmov %vm1847_vm2 }
 0x177   :  { %v442_v50 = vsel %vm1849_vm11, %v399_v2, 0.0  ;;  %v243_v32 = vsel %vm239_vm5, %v238_v56, %v1241_v24  ;;  %v226_v28 = vmul.f32 %v1125_v26, %v218_v40  ;;  %v380_v17 = vmul.f32 %v1176_v48, %v372_v60 }
 0x178   :  { %v385_v15 = vadd.f32 %v381_v62, %v306_v30  ;;  %v450_v4 = vmul.f32 %v1178_v49, %v442_v50  ;;  %v307_v61 = vadd.f32 %v303_v41, %v225_v37  ;;  %v293_v31 = vsel %vm289_vm13, %v243_v32, 0.0 }
 0x179   :  { %v296_v24 = vsel %vm1850_vm12, %v240_v7, 0.0  ;;  %v395_v29 = vpop.permute.xlu1 %394  ;;  %v472_v6 = vpop.permute.xlu0 %471  ;;  %vm586_vm5 = vcmp.eq.s32.totalorder %v1504_v20, 1  ;;  %v383_v26 = vmul.f32 %v1176_v48, %v375_v18  ;;  %vm1851_vm0 = vcmp.eq.s32.totalorder %v1477_v10, 1  ;;  %v1861_v20 = vld [vmem:[#allocation15_spill] sm:$0xff] }
 0x17a   :  { %v443_v34 = vsel %vm1851_vm0, %v398_v44, 0.0  ;;  %v301_v39 = vmul.f32 %v1174_v47, %v293_v31  ;;  %v304_v13 = vmul.f32 %v1174_v47, %v296_v24  ;;  %vm588_vm8 = vcmp.eq.s32.totalorder %v1524_v5, 1  ;;  %v1860_v24 = vld [vmem:[#allocation16_spill] sm:$0xff] }
 0x17b   :  { %vm589_vm13 = vcmp.eq.s32.totalorder %v1527_v9, 1  ;;  %v454_v21 = vadd.f32 %v450_v4, %v385_v15  ;;  %v397_v27 = vsel %vm1847_vm2, %v1243_v25, %v395_v29  ;;  %v400_v48 = vsel %vm1852_vm3, %v395_v29, %v1299_v43  ;;  %v1858_v15 = vld [vmem:[#allocation20_spill] sm:$0xff] }
 0x17c   :  { %vm1853_vm11 = vcmp.lt.s32.totalorder %v1318_v58, 127  ;;  %vm614_vm12 = vcmp.lt.s32.totalorder %v1318_v58, 112  ;;  %v305_v47 = vadd.f32 %v301_v39, %v223_v38  ;;  %v308_v37 = vadd.f32 %v304_v13, %v226_v28  ;;  %v1856_v38 = vld [vmem:[#allocation19_spill] sm:$0xff]  ;;  %v1862_v13 = vld [vmem:[#allocation22_spill] sm:$0xff] }
 0x17d   :  { %v479_v10 = vsel %vm1853_vm11, %v472_v6, %v1397_v59  ;;  %v441_v16 = vsel %vm437_vm4, %v400_v48, 0.0  ;;  %v444_v62 = vsel %vm440_vm1, %v397_v27, 0.0  ;;  %vm655_vm0 = vcmp.eq.s32.totalorder %v1540_v52, 1  ;;  %vm1854_vm2 = vmmov %vm1853_vm11  ;;  %v540_v54 = vpop.permute.xlu1 %539  ;;  %v476_v18 = vpop.permute.xlu0 %475  ;;  %v1863_v48 = vld [vmem:[#allocation21_spill] sm:$0xff] }
 0x17e   :  { %v386_v25 = vadd.f32 %v382_v33, %v307_v61  ;;  %v451_v40 = vmul.f32 %v1178_v49, %v443_v34  ;;  %v449_v43 = vmul.f32 %v1178_v49, %v441_v16  ;;  %v480_v41 = vsel %vm1854_vm2, %v1338_v11, %v472_v6  ;;  %v1864_v16 = vld [vmem:[#allocation24_spill] sm:$0xff] }
 0x17f   :  { %vm654_vm3 = vcmp.eq.s32.totalorder %v1537_v19, 1  ;;  %v384_v56 = vadd.f32 %v380_v17, %v305_v47  ;;  %v387_v3 = vadd.f32 %v383_v26, %v308_v37  ;;  %v452_v60 = vmul.f32 %v1178_v49, %v444_v62 }
 0x180   :  { %v522_v57 = vsel %vm518_vm10, %v479_v10, 0.0  ;;  %v466_v33 = vadd.f32 %v1328_v1, %v454_v21  ;;  %v547_v30 = vsel %vm545_vm6, %v540_v54, %v1301_v45  ;;  %v701_v2 = vrot.slane %v1473_v12, %v1279_v36  ;;  %v1855_v1 = vld [vmem:[#allocation25_spill] sm:$0xff]  ;;  %vm1857_vm10 = vmmov %vm1854_vm2 }
 0x181   :  { %v705_v44 = vrot.slane %v1473_v12, %v1303_v46  ;;  %v453_v50 = vadd.f32 %v449_v43, %v384_v56  ;;  %v521_v49 = vsel %vm517_vm9, %v480_v41, 0.0  ;;  %v530_v23 = vmul.f32 %v1185_v53, %v522_v57  ;;  %v544_v42 = vpop.permute.xlu1 %543  ;;  %vm1859_vm9 = vmmov %vm1854_vm2 }
 0x182   :  { %v591_v7 = vsel %vm587_vm14, %v547_v30, 0.0  ;;  %vm656_vm1 = vcmp.eq.s32.totalorder %v1544_v8, 1  ;;  %vm657_vm4 = vcmp.eq.s32.totalorder %v1855_v1, 1  ;;  %v455_v32 = vadd.f32 %v451_v40, %v386_v25  ;;  %v1865_v40 = vld [vmem:[#allocation17_spill] sm:$0xff] }
 0x183   :  { %v548_v36 = vsel %vm545_vm6, %v1856_v38, %v540_v54  ;;  %v478_v46 = vsel %vm1857_vm10, %v1397_v59, %v476_v18  ;;  %v456_v28 = vadd.f32 %v452_v60, %v387_v3  ;;  %v465_v4 = vadd.f32 %v1858_v15, %v453_v50 }
 0x184   :  { %v481_v17 = vsel %vm1859_vm9, %v476_v18, %v1338_v11  ;;  %v523_v61 = vsel %vm519_vm15, %v478_v46, 0.0  ;;  %v529_v31 = vmul.f32 %v1185_v53, %v521_v49  ;;  %v599_v59 = vmul.f32 %v1860_v24, %v591_v7  ;;  %v1866_v46 = vld [vmem:[#allocation23_spill] sm:$0xff] }
 0x185   :  { %v524_v29 = vsel %vm520_vm7, %v481_v17, 0.0  ;;  %v546_v12 = vsel %vm545_vm6, %v1301_v45, %v544_v42  ;;  %vm682_vm14 = vcmp.lt.s32.totalorder %v1318_v58, 111  ;;  %v534_v35 = vadd.f32 %v530_v23, %v466_v33  ;;  %v609_v34 = vpop.permute.xlu1 %608  ;;  %v679_v23 = vpop.permute.xlu0 %678 }
 0x186   :  { %v590_v63 = vsel %vm586_vm5, %v548_v36, 0.0  ;;  %v549_v11 = vsel %vm545_vm6, %v544_v42, %v1856_v38  ;;  %vm722_vm15 = vcmp.eq.s32.totalorder %v1552_v55, 1  ;;  %v717_v22 = vrot.slane %v701_v2, %v1310_v51 }
 0x187   :  { %v533_v0 = vadd.f32 %v529_v31, %v465_v4  ;;  %v531_v6 = vmul.f32 %v1185_v53, %v523_v61  ;;  %v592_v45 = vsel %vm588_vm8, %v546_v12, 0.0  ;;  %v593_v26 = vsel %vm589_vm13, %v549_v11, 0.0 }
 0x188   :  { %v467_v39 = vadd.f32 %v1861_v20, %v455_v32  ;;  %v468_v21 = vadd.f32 %v1862_v13, %v456_v28  ;;  %v532_v27 = vmul.f32 %v1185_v53, %v524_v29  ;;  %v616_v10 = vsel %vm614_vm12, %v609_v34, %v1863_v48 }
 0x189   :  { %v598_v47 = vmul.f32 %v1860_v24, %v590_v63  ;;  %v603_v37 = vadd.f32 %v599_v59, %v534_v35  ;;  %v617_v5 = vsel %vm614_vm12, %v1864_v16, %v609_v34  ;;  %v659_v9 = vsel %vm655_vm0, %v616_v10, 0.0  ;;  %v613_v3 = vpop.permute.xlu1 %612 }
 0x18a   :  { %v600_v62 = vmul.f32 %v1860_v24, %v592_v45  ;;  %v601_v25 = vmul.f32 %v1860_v24, %v593_v26  ;;  %v658_v53 = vsel %vm654_vm3, %v617_v5, 0.0  ;;  %v667_v43 = vmul.f32 %v1865_v40, %v659_v9 }
 0x18b   :  { %v602_v41 = vadd.f32 %v598_v47, %v533_v0  ;;  %v535_v54 = vadd.f32 %v531_v6, %v467_v39  ;;  %v666_v56 = vmul.f32 %v1865_v40, %v658_v53  ;;  %v721_v60 = vrot.slane %v705_v44, %v1310_v51 }
 0x18c   :  { %v536_v57 = vadd.f32 %v532_v27, %v468_v21  ;;  %v671_v18 = vadd.f32 %v667_v43, %v603_v37  ;;  %v615_v52 = vsel %vm614_vm12, %v1863_v48, %v613_v3  ;;  %v618_v19 = vsel %vm614_vm12, %v613_v3, %v1864_v16  ;;  %v970_v27 = vld [vmem:[%s1778_s4] sm:$0xff]   ;;  %s1038_s4 = smov [#allocation5]  }
 0x18d   :  { %v670_v33 = vadd.f32 %v666_v56, %v602_v41  ;;  %v660_v30 = vsel %vm656_vm1, %v615_v52, 0.0  ;;  %v661_v2 = vsel %vm657_vm4, %v618_v19, 0.0  ;;  %vm723_vm6 = vcmp.eq.s32.totalorder %v713_v14, 1  ;;  %v677_v7 = vpop.permute.xlu1 %676  ;;  %v1867_v14 = vld [vmem:[#allocation18_spill] sm:$0xff]  ;;  %v1869_v3 = vld [vmem:[#allocation8_spill] sm:$0xff]  ;;  %v1870_v19 = vld [vmem:[#allocation13_spill] sm:$0xff] }
 0x18e   :  { %v604_v50 = vadd.f32 %v600_v62, %v535_v54  ;;  %v605_v51 = vadd.f32 %v601_v25, %v536_v57  ;;  %v668_v44 = vmul.f32 %v1865_v40, %v660_v30  ;;  %v669_v49 = vmul.f32 %v1865_v40, %v661_v2  ;;  %v744_v17 = vpop.permute.xlu0 %743  ;;  %v1868_v25 = vld [vmem:[#allocation11_spill] sm:$0xff]  ;;  %s909_s19 = sshll.u32 %s1038_s4, 4  ;;  %s910_s19 = int_to_ptr.vmem [resolvable:$true] %s909_s19 }
 0x18f   :  { %v684_v36 = vsel %vm682_vm14, %v677_v7, %v679_v23  ;;  %v685_v8 = vsel %vm682_vm14, %v1866_v46, %v677_v7  ;;  %vm724_vm7 = vcmp.eq.s32.totalorder %v717_v22, 1  ;;  %vm725_vm5 = vcmp.eq.s32.totalorder %v721_v60, 1  ;;  %v1872_v7 = vld [vmem:[#allocation10_spill] sm:$0xff]  ;;  %s992_s20 = scalar_lea.vmem %s910_s19, 1024  ;;  %p997_p6 = scmp.lt.s32.totalorder %s910_s19, %s910_s19 }
 0x190   :  { %v672_v32 = vadd.f32 %v668_v44, %v604_v50  ;;  %v673_v38 = vadd.f32 %v669_v49, %v605_v51  ;;  %v726_v1 = vsel %vm722_vm15, %v685_v8, 0.0  ;;  %v727_v42 = vsel %vm723_vm6, %v684_v36, 0.0  ;;  %v1871_v50 = vld [vmem:[#allocation12_spill] sm:$0xff]  ;;  %p993_p5 = scmp.ne.s32.totalorder %s910_s19, %s992_s20  ;;  %p998_p7 = scmp.lt.s32.totalorder %s992_s20, %s992_s20 }
 0x191   :  { %v734_v28 = vmul.f32 %v1867_v14, %v726_v1  ;;  %v735_v15 = vmul.f32 %v1867_v14, %v727_v42  ;;  %v681_v4 = vpop.permute.xlu1 %680  ;;  %vm781_vm8 = vcmask 1041408   ;;  %vm777_vm13 = vcmask 31744  }
 0x192   :  { %v683_v61 = vsel %vm682_vm14, %v679_v23, %v681_v4  ;;  %v686_v31 = vsel %vm682_vm14, %v681_v4, %v1866_v46  ;;  %v1873_v46 = vld [vmem:[#allocation9_spill] sm:$0xff]  ;;  %p999_p8 = por %p998_p7, %p997_p6 }
 0x193   :  { %v738_v24 = vadd.f32 %v734_v28, %v670_v33  ;;  %v739_v59 = vadd.f32 %v735_v15, %v671_v18  ;;  %v728_v55 = vsel %vm724_vm7, %v683_v61, 0.0  ;;  %v729_v29 = vsel %vm725_vm5, %v686_v31, 0.0  ;;  %v971_v61 = vld [vmem:[#allocation2 + $0x38] sm:$0xff] }
 0x194   :  { %v736_v12 = vmul.f32 %v1867_v14, %v728_v55  ;;  %v737_v35 = vmul.f32 %v1867_v14, %v729_v29  ;;  %v1874_v14 = vld [vmem:[#allocation14_spill] sm:$0xff]  ;;  %p1000_p9 = pnand %p999_p8, %p993_p5 }
 0x195   :  { %v746_v63 = vadd.f32 %v744_v17, %v738_v24  ;;  %v747_v11 = vadd.f32 %v744_v17, %v739_v59 }
 0x196   :  { %v740_v22 = vadd.f32 %v736_v12, %v672_v32  ;;  %v741_v0 = vadd.f32 %v737_v35, %v673_v38 }
 0x197   :  { %v750_v6 = vmax.f32 %v746_v63, 0.0  ;;  %v751_v45 = vmax.f32 %v747_v11, 0.0 }
 0x198   :  { %v748_v26 = vadd.f32 %v744_v17, %v740_v22  ;;  %v749_v34 = vadd.f32 %v744_v17, %v741_v0 }
 0x199   :  { %v756_v20 = vpack.c.bf16 %v750_v6, %v750_v6  ;;  %v757_v58 = vpack.c.bf16 %v751_v45, %v751_v45 }
 0x19a   :  { %v752_v39 = vmax.f32 %v748_v26, 0.0  ;;  %v753_v13 = vmax.f32 %v749_v34, 0.0 }
 0x19b   :  { %930 = vmatprep.subr.msk.bf16.mxu0 %vm781_vm8, %v757_v58  ;;  %v783_v21 = vsel %vm781_vm8, %v756_v20, 0 }
 0x19c   :  { %809 = vmatpush1.bf16.msra.mxu0 %v783_v21  ;;  %v758_v48 = vpack.c.bf16 %v752_v39, %v752_v39  ;;  %v759_v10 = vpack.c.bf16 %v753_v13, %v753_v13 }
 0x19e   :  { %932 = vmatprep.subr.msk.bf16.mxu1 %vm781_vm8, %v759_v10  ;;  %v789_v47 = vsel %vm781_vm8, %v758_v48, 0  ;;  %v765_v37 = vpop.permute.xlu1 %764 }
 0x19f   :  { %931 = vmatmul.mubr.msk.bf16.vlgmr.msra.gmra.mxu0 %vm777_vm13, %v970_v27  ;;  %852 = vmatpush1.bf16.msra.mxu1 %v789_v47 }
 0x1a2   :  { %933 = vmatmul.mubr.msk.bf16.vlgmr.msra.gmra.mxu1 %vm777_vm13, %v970_v27  ;;  %v770_v62 = vpop.permute.xlu1 %769 }
 0x25f   :  { %v828_v16 = vpop.f32.mrf.mxu0 }
 0x260   :  { %v829_v5 = vadd.f32 %v828_v16, %v765_v37 }
 0x261   :  { %v830_v9 = vpop.f32.mrf.mxu0 }
 0x262   :  { %v880_v53 = vadd.f32 %v829_v5, %v1868_v25  ;;  %v831_v40 = vadd.f32 %v830_v9, %v765_v37  ;;  %v871_v43 = vpop.f32.mrf.mxu1 }
 0x263   :  { %v832_v41 = vpop.f32.mrf.mxu0  ;;  %v872_v54 = vadd.f32 %v871_v43, %v765_v37 }
 0x264   :  { %v888_v56 = vmax.f32 %v880_v53, 0.0  ;;  %v881_v60 = vadd.f32 %v831_v40, %v1869_v3  ;;  %v833_v57 = vadd.f32 %v832_v41, %v770_v62  ;;  %v873_v18 = vpop.f32.mrf.mxu1 }
 0x265   :  { %v834_v52 = vpop.f32.mrf.mxu0  ;;  %v882_v33 = vadd.f32 %v872_v54, %v1870_v19  ;;  %v874_v2 = vadd.f32 %v873_v18, %v765_v37 }
 0x266   :  { %896 = vst [vmem:[#allocation5] sm:$0xff] %v888_v56  ;;  %v889_v30 = vmax.f32 %v881_v60, 0.0  ;;  %v884_v51 = vadd.f32 %v833_v57, %v1871_v50  ;;  %v875_v44 = vpop.f32.mrf.mxu1  ;;  %v835_v49 = vadd.f32 %v834_v52, %v770_v62 }
 0x267   :  { %v890_v23 = vmax.f32 %v882_v33, 0.0  ;;  %v883_v32 = vadd.f32 %v874_v2, %v1872_v7  ;;  %v876_v38 = vadd.f32 %v875_v44, %v770_v62 }
 0x268   :  { %897 = vst [vmem:[#allocation5 + $0x8] sm:$0xff] %v889_v30  ;;  %v892_v36 = vmax.f32 %v884_v51, 0.0  ;;  %v885_v8 = vadd.f32 %v835_v49, %v1873_v46  ;;  %v877_v1 = vpop.f32.mrf.mxu1 }
 0x269   :  { %898 = vst [vmem:[#allocation5 + $0x10] sm:$0xff] %v890_v23  ;;  %v891_v42 = vmax.f32 %v883_v32, 0.0  ;;  %v886_v28 = vadd.f32 %v876_v38, %v1874_v14  ;;  %v878_v15 = vadd.f32 %v877_v1, %v770_v62 }
 0x26a   :  { %900 = vst [vmem:[#allocation5 + $0x20] sm:$0xff] %v892_v36  ;;  %v893_v4 = vmax.f32 %v885_v8, 0.0 }
 0x26b   :  { %899 = vst [vmem:[#allocation5 + $0x18] sm:$0xff] %v891_v42  ;;  %v894_v17 = vmax.f32 %v886_v28, 0.0  ;;  %v887_v31 = vadd.f32 %v971_v61, %v878_v15 }
 0x26c   :  { %901 = vst [vmem:[#allocation5 + $0x28] sm:$0xff] %v893_v4 }
 0x26d   :  { %902 = vst [vmem:[#allocation5 + $0x30] sm:$0xff] %v894_v17  ;;  %v895_v24 = vmax.f32 %v887_v31, 0.0 }
 0x26f   :  { %903 = vst [vmem:[#allocation5 + $0x38] sm:$0xff] %v895_v24 }
 0x270   :  { %1003 = shalt.err (!%p1000_p9)
}
 0x271   :  { %915 = dma.vmem_to_hbm [thread:$0]  %s910_s19, 1024, %s1780_s6, [#allocation4], %s1017_s24, %s1017_s24, %s1018_s25  }
 0x272   :  { %1014 = dma.done.wait [#allocation4], 1024  }
 0x273   :  { %1015 = vsyncadd [#allocation4], 4294966272 }
 0x274   :  { %919 = vsyncpa [#allocation3], 1 }
 0x275   :  { %920 = vsyncpa [#allocation4], 1 }

</bundles_post_ra>
